<compile_context>
chip_gen: v7x
topology: tpu7x:2x2x1
jax: 0.10.0
libtpu: 0.0.40
codegen_flags: <defaults>
</compile_context>

<pallas_src>
import functools

import jax
import jax.numpy as jnp
from jax import lax
from jax.experimental import pallas as pl
from jax.experimental.pallas import tpu as pltpu


# ----------------------------------------------------------------------------
# Fused Pallas kernel: wavefront LSTM recurrence + FC head, single invocation.
# ----------------------------------------------------------------------------
def _make_fused_kernel(num_layers, S, B, H, C):
    L = num_layers
    G = 4 * H

    def kernel(x_ref, wih0_ref, wbig_ref, bbig_ref, wfc_ref, bfc_ref, out_ref):
        # Hoisted layer-0 input projection over the whole sequence: (S*B, I) @ (I, 4H).
        xproj0 = jnp.dot(x_ref[...], wih0_ref[...],
                         preferred_element_type=jnp.float32)                 # (S*B, 4H)
        w_big = wbig_ref[...]                                                # (L*H, L*4H)
        b_big = bbig_ref[...]                                                # (1, L*4H)

        # Per-layer running hidden / cell states, kept in vregs (never hit VMEM scratch).
        h = [jnp.zeros((B, H), jnp.float32) for _ in range(L)]
        c = [jnp.zeros((B, H), jnp.float32) for _ in range(L)]

        # Wavefront over diagonals d = t + l: S + L - 1 serial epochs instead of S*L.
        # All states consumed on diagonal d were produced on diagonal d-1, so a single
        # snapshot matmul at the top of the diagonal covers every active layer.
        for d in range(S + L - 1):
            h_all = h[0] if L == 1 else jnp.concatenate(h, axis=1)           # (B, L*H)
            # One wide MXU op per diagonal: recurrent + inter-layer input contributions
            # for all layers' gates (block-bidiagonal W_big packs W_hh_l^T and W_ih_{l+1}^T).
            gates_all = jnp.dot(h_all, w_big,
                                preferred_element_type=jnp.float32) + b_big  # (B, L*4H)

            for l in range(L):
                t = d - l
                if not (0 <= t < S):
                    continue                      # layer inactive on this diagonal (static)
                g = gates_all[:, l * G:(l + 1) * G]        # vreg-aligned slice (multiple of 128)
                if l == 0:
                    g = g + xproj0[t * B:(t + 1) * B, :]   # layer-0 input term (precomputed)
                # Full-vreg sigmoid (i, f, o quarters used); tanh only on the g quarter.
                sig = jax.nn.sigmoid(g)
                i_g = sig[:, 0 * H:1 * H]
                f_g = sig[:, 1 * H:2 * H]
                o_g = sig[:, 3 * H:4 * H]
                g_g = jnp.tanh(g[:, 2 * H:3 * H])
                c_new = f_g * c[l] + i_g * g_g
                h_new = o_g * jnp.tanh(c_new)
                c[l] = c_new
                h[l] = h_new

        # FC head on all layers' final hidden states in ONE matmul; rows ordered
        # (layer, batch) == h_out.view(-1, hidden) in the PyTorch module.
        h_fin = h[0] if L == 1 else jnp.concatenate(h, axis=0)               # (L*B, H)
        out_ref[...] = (jnp.dot(h_fin, wfc_ref[...],
                                preferred_element_type=jnp.float32) + bfc_ref[...])

    return kernel


# ----------------------------------------------------------------------------
# Parameter preparation (done ONCE, outside the per-call path).
# ----------------------------------------------------------------------------
def prepare_params(params, num_layers, hidden_size):
    """Pre-transpose / block-pack weights into the layout the fused kernel expects."""
    L, H = num_layers, hidden_size
    w_ih0 = params["layer0"][0]
    wih0_t = jnp.transpose(w_ih0).astype(jnp.float32)                        # (I, 4H)

    # Block-bidiagonal recurrent/inter-layer weight matrix:
    #   row block l, col block l     <- W_hh_l^T      (recurrent)
    #   row block l, col block l+1   <- W_ih_{l+1}^T  (next layer's input)
    w_big = jnp.zeros((L * H, L * 4 * H), jnp.float32)
    b_big = jnp.zeros((1, L * 4 * H), jnp.float32)
    for l in range(L):
        w_ih, w_hh, b_ih, b_hh = params[f"layer{l}"]
        w_big = w_big.at[l * H:(l + 1) * H, l * 4 * H:(l + 1) * 4 * H].set(
            jnp.transpose(w_hh).astype(jnp.float32))
        if l + 1 < L:
            w_ih_next = params[f"layer{l + 1}"][0]                           # (4H, H)
            w_big = w_big.at[l * H:(l + 1) * H, (l + 1) * 4 * H:(l + 2) * 4 * H].set(
                jnp.transpose(w_ih_next).astype(jnp.float32))
        b_big = b_big.at[0, l * 4 * H:(l + 1) * 4 * H].set(
            (b_ih + b_hh).astype(jnp.float32))

    w_fc, b_fc = params["fc"]
    return {
        "wih0_t": wih0_t,                                                    # (I, 4H)
        "w_big": w_big,                                                      # (L*H, L*4H)
        "b_big": b_big,                                                      # (1, L*4H)
        "wfc_t": jnp.transpose(w_fc).astype(jnp.float32),                    # (H, C)
        "bfc": b_fc.reshape(1, -1).astype(jnp.float32),                      # (1, C)
    }


# ----------------------------------------------------------------------------
# Forward wrapper
# ----------------------------------------------------------------------------
@functools.partial(jax.jit, static_argnames=("num_layers",))
def lstm_model_forward(x, prepped, num_layers):
    """x: (batch, seq, input_size). Returns (num_layers * batch, num_classes)."""
    B, S, I = x.shape
    H, C = prepped["wfc_t"].shape

    # (batch, seq, in) -> (seq, batch, in) -> (seq*batch, in), rows ordered (t, b)
    x2d = jnp.transpose(x, (1, 0, 2)).reshape(S * B, I).astype(jnp.float32)

    flat_in = [x2d, prepped["wih0_t"], prepped["w_big"], prepped["b_big"],
               prepped["wfc_t"], prepped["bfc"]]

    kernel = _make_fused_kernel(num_layers, S, B, H, C)

    return pl.pallas_call(
        kernel,
        out_shape=jax.ShapeDtypeStruct((num_layers * B, C), jnp.float32),
        in_specs=[pl.BlockSpec(memory_space=pltpu.MemorySpace.VMEM)] * len(flat_in),
        out_specs=pl.BlockSpec(memory_space=pltpu.MemorySpace.VMEM),
    )(*flat_in)


# ----------------------------------------------------------------------------
# Pure-JAX reference (for correctness check)
# ----------------------------------------------------------------------------
def lstm_reference(x, params, num_layers):
    B = x.shape[0]
    x_seq = jnp.transpose(x, (1, 0, 2)).astype(jnp.float32)
    finals = []
    inp = x_seq
    for l in range(num_layers):
        w_ih, w_hh, b_ih, b_hh = params[f"layer{l}"]
        H = w_hh.shape[1]

        def step(carry, x_t):
            h, c = carry
            g = x_t @ w_ih.T + h @ w_hh.T + b_ih + b_hh
            i = jax.nn.sigmoid(g[:, 0 * H:1 * H])
            f = jax.nn.sigmoid(g[:, 1 * H:2 * H])
            gg = jnp.tanh(g[:, 2 * H:3 * H])
            o = jax.nn.sigmoid(g[:, 3 * H:4 * H])
            c = f * c + i * gg
            h = o * jnp.tanh(c)
            return (h, c), h

        (h_f, _), h_seq = lax.scan(step, (jnp.zeros((B, H)), jnp.zeros((B, H))), inp)
        finals.append(h_f)
        inp = h_seq
    h_out = jnp.stack(finals, axis=0).reshape(-1, finals[0].shape[-1])
    w_fc, b_fc = params["fc"]
    return h_out @ w_fc.T + b_fc


# ----------------------------------------------------------------------------
# Main
# ----------------------------------------------------------------------------
if __name__ == "__main__":
    num_classes = 4
    input_size = 8
    hidden_size = 32
    num_layers = 2
    seq_length = 8
    batch = 2

    key = jax.random.PRNGKey(0)
    keys = iter(jax.random.split(key, 4 * num_layers + 3))

    scale = 1.0 / jnp.sqrt(hidden_size)
    params = {}
    for l in range(num_layers):
        in_feat = input_size if l == 0 else hidden_size
        w_ih = jax.random.uniform(next(keys), (4 * hidden_size, in_feat), jnp.float32, -scale, scale)
        w_hh = jax.random.uniform(next(keys), (4 * hidden_size, hidden_size), jnp.float32, -scale, scale)
        b_ih = jax.random.uniform(next(keys), (4 * hidden_size,), jnp.float32, -scale, scale)
        b_hh = jax.random.uniform(next(keys), (4 * hidden_size,), jnp.float32, -scale, scale)
        params[f"layer{l}"] = (w_ih, w_hh, b_ih, b_hh)
    w_fc = jax.random.uniform(next(keys), (num_classes, hidden_size), jnp.float32, -scale, scale)
    b_fc = jax.random.uniform(next(keys), (num_classes,), jnp.float32, -scale, scale)
    params["fc"] = (w_fc, b_fc)

    x = jax.random.normal(next(keys), (batch, seq_length, input_size), jnp.float32)

    prepped = prepare_params(params, num_layers, hidden_size)   # one-time weight layout prep

    out = lstm_model_forward(x, prepped, num_layers)
    out = jax.block_until_ready(out)

    ref = lstm_reference(x, params, num_layers)
    assert out.shape == (num_layers * batch, num_classes), out.shape
    assert jnp.allclose(out, ref, atol=1e-5, rtol=1e-5), float(jnp.max(jnp.abs(out - ref)))

    print("KERNEL_OK")
</pallas_src>

<mosaic_0001>
module attributes {stable_mosaic.version = 11 : i64} {
  func.func @kernel(%arg0: memref<16x8xf32, #tpu.memory_space<vmem>>, %arg1: memref<8x128xf32, #tpu.memory_space<vmem>>, %arg2: memref<64x256xf32, #tpu.memory_space<vmem>>, %arg3: memref<1x256xf32, #tpu.memory_space<vmem>>, %arg4: memref<32x4xf32, #tpu.memory_space<vmem>>, %arg5: memref<1x4xf32, #tpu.memory_space<vmem>>, %arg6: memref<4x4xf32, #tpu.memory_space<vmem>>) attributes {dimension_semantics = [], scalar_prefetch = 0 : i64, scratch_operands = 0 : i64, tpu.core_type = #tpu.core_type<tc>} {
    %c0 = arith.constant 0 : index
    %c0_0 = arith.constant 0 : index
    %0 = vector.load %arg0[%c0, %c0_0] : memref<16x8xf32, #tpu.memory_space<vmem>>, vector<16x8xf32>
    %c0_1 = arith.constant 0 : index
    %c0_2 = arith.constant 0 : index
    %1 = vector.load %arg1[%c0_1, %c0_2] : memref<8x128xf32, #tpu.memory_space<vmem>>, vector<8x128xf32>
    %cst = arith.constant dense<0.000000e+00> : vector<16x128xf32>
    %2 = tpu.matmul %0, %1, %cst {dimension_numbers = #tpu.dot_dimension_numbers<[1], [0], [0], [1], [0, 0, 1, 1], [], []>} : vector<16x8xf32>, vector<8x128xf32>, vector<16x128xf32> -> vector<16x128xf32>
    %c0_3 = arith.constant 0 : index
    %c0_4 = arith.constant 0 : index
    %3 = vector.load %arg2[%c0_3, %c0_4] : memref<64x256xf32, #tpu.memory_space<vmem>>, vector<64x256xf32>
    %c0_5 = arith.constant 0 : index
    %c0_6 = arith.constant 0 : index
    %4 = vector.load %arg3[%c0_5, %c0_6] : memref<1x256xf32, #tpu.memory_space<vmem>>, vector<1x256xf32>
    %cst_7 = arith.constant 0.000000e+00 : f32
    %5 = vector.broadcast %cst_7 : f32 to vector<2x32xf32>
    %cst_8 = arith.constant 0.000000e+00 : f32
    %6 = vector.broadcast %cst_8 : f32 to vector<2x32xf32>
    %cst_9 = arith.constant 0.000000e+00 : f32
    %7 = vector.broadcast %cst_9 : f32 to vector<2x32xf32>
    %cst_10 = arith.constant 0.000000e+00 : f32
    %8 = vector.broadcast %cst_10 : f32 to vector<2x32xf32>
    %9 = tpu.concatenate %5, %6 in 1 : vector<2x32xf32>, vector<2x32xf32> -> vector<2x64xf32>
    %cst_11 = arith.constant dense<0.000000e+00> : vector<2x256xf32>
    %10 = tpu.matmul %9, %3, %cst_11 {dimension_numbers = #tpu.dot_dimension_numbers<[1], [0], [0], [1], [0, 0, 1, 1], [], []>} : vector<2x64xf32>, vector<64x256xf32>, vector<2x256xf32> -> vector<2x256xf32>
    %11 = vector.broadcast %4 : vector<1x256xf32> to vector<2x256xf32>
    %12 = arith.addf %10, %11 : vector<2x256xf32>
    %13 = vector.extract_strided_slice %12 {offsets = [0, 0], sizes = [2, 128], strides = [1, 1]} : vector<2x256xf32> to vector<2x128xf32>
    %14 = vector.extract_strided_slice %2 {offsets = [0, 0], sizes = [2, 128], strides = [1, 1]} : vector<16x128xf32> to vector<2x128xf32>
    %15 = arith.addf %13, %14 : vector<2x128xf32>
    %16 = arith.negf %15 : vector<2x128xf32>
    %17 = math.exp %16 : vector<2x128xf32>
    %cst_12 = arith.constant 1.000000e+00 : f32
    %18 = vector.broadcast %cst_12 : f32 to vector<2x128xf32>
    %19 = arith.addf %18, %17 : vector<2x128xf32>
    %20 = arith.divf %18, %19 : vector<2x128xf32>
    %21 = vector.extract_strided_slice %20 {offsets = [0, 0], sizes = [2, 32], strides = [1, 1]} : vector<2x128xf32> to vector<2x32xf32>
    %22 = vector.extract_strided_slice %20 {offsets = [0, 32], sizes = [2, 32], strides = [1, 1]} : vector<2x128xf32> to vector<2x32xf32>
    %23 = vector.extract_strided_slice %20 {offsets = [0, 96], sizes = [2, 32], strides = [1, 1]} : vector<2x128xf32> to vector<2x32xf32>
    %24 = vector.extract_strided_slice %15 {offsets = [0, 64], sizes = [2, 32], strides = [1, 1]} : vector<2x128xf32> to vector<2x32xf32>
    %25 = math.tanh %24 : vector<2x32xf32>
    %26 = arith.mulf %22, %7 : vector<2x32xf32>
    %27 = arith.mulf %21, %25 : vector<2x32xf32>
    %28 = arith.addf %26, %27 : vector<2x32xf32>
    %29 = math.tanh %28 : vector<2x32xf32>
    %30 = arith.mulf %23, %29 : vector<2x32xf32>
    %31 = tpu.concatenate %30, %6 in 1 : vector<2x32xf32>, vector<2x32xf32> -> vector<2x64xf32>
    %cst_13 = arith.constant dense<0.000000e+00> : vector<2x256xf32>
    %32 = tpu.matmul %31, %3, %cst_13 {dimension_numbers = #tpu.dot_dimension_numbers<[1], [0], [0], [1], [0, 0, 1, 1], [], []>} : vector<2x64xf32>, vector<64x256xf32>, vector<2x256xf32> -> vector<2x256xf32>
    %33 = vector.broadcast %4 : vector<1x256xf32> to vector<2x256xf32>
    %34 = arith.addf %32, %33 : vector<2x256xf32>
    %35 = vector.extract_strided_slice %34 {offsets = [0, 0], sizes = [2, 128], strides = [1, 1]} : vector<2x256xf32> to vector<2x128xf32>
    %36 = vector.extract_strided_slice %2 {offsets = [2, 0], sizes = [2, 128], strides = [1, 1]} : vector<16x128xf32> to vector<2x128xf32>
    %37 = arith.addf %35, %36 : vector<2x128xf32>
    %38 = arith.negf %37 : vector<2x128xf32>
    %39 = math.exp %38 : vector<2x128xf32>
    %cst_14 = arith.constant 1.000000e+00 : f32
    %40 = vector.broadcast %cst_14 : f32 to vector<2x128xf32>
    %41 = arith.addf %40, %39 : vector<2x128xf32>
    %42 = arith.divf %40, %41 : vector<2x128xf32>
    %43 = vector.extract_strided_slice %42 {offsets = [0, 0], sizes = [2, 32], strides = [1, 1]} : vector<2x128xf32> to vector<2x32xf32>
    %44 = vector.extract_strided_slice %42 {offsets = [0, 32], sizes = [2, 32], strides = [1, 1]} : vector<2x128xf32> to vector<2x32xf32>
    %45 = vector.extract_strided_slice %42 {offsets = [0, 96], sizes = [2, 32], strides = [1, 1]} : vector<2x128xf32> to vector<2x32xf32>
    %46 = vector.extract_strided_slice %37 {offsets = [0, 64], sizes = [2, 32], strides = [1, 1]} : vector<2x128xf32> to vector<2x32xf32>
    %47 = math.tanh %46 : vector<2x32xf32>
    %48 = arith.mulf %44, %28 : vector<2x32xf32>
    %49 = arith.mulf %43, %47 : vector<2x32xf32>
    %50 = arith.addf %48, %49 : vector<2x32xf32>
    %51 = math.tanh %50 : vector<2x32xf32>
    %52 = arith.mulf %45, %51 : vector<2x32xf32>
    %53 = vector.extract_strided_slice %34 {offsets = [0, 128], sizes = [2, 128], strides = [1, 1]} : vector<2x256xf32> to vector<2x128xf32>
    %54 = arith.negf %53 : vector<2x128xf32>
    %55 = math.exp %54 : vector<2x128xf32>
    %cst_15 = arith.constant 1.000000e+00 : f32
    %56 = vector.broadcast %cst_15 : f32 to vector<2x128xf32>
    %57 = arith.addf %56, %55 : vector<2x128xf32>
    %58 = arith.divf %56, %57 : vector<2x128xf32>
    %59 = vector.extract_strided_slice %58 {offsets = [0, 0], sizes = [2, 32], strides = [1, 1]} : vector<2x128xf32> to vector<2x32xf32>
    %60 = vector.extract_strided_slice %58 {offsets = [0, 32], sizes = [2, 32], strides = [1, 1]} : vector<2x128xf32> to vector<2x32xf32>
    %61 = vector.extract_strided_slice %58 {offsets = [0, 96], sizes = [2, 32], strides = [1, 1]} : vector<2x128xf32> to vector<2x32xf32>
    %62 = vector.extract_strided_slice %53 {offsets = [0, 64], sizes = [2, 32], strides = [1, 1]} : vector<2x128xf32> to vector<2x32xf32>
    %63 = math.tanh %62 : vector<2x32xf32>
    %64 = arith.mulf %60, %8 : vector<2x32xf32>
    %65 = arith.mulf %59, %63 : vector<2x32xf32>
    %66 = arith.addf %64, %65 : vector<2x32xf32>
    %67 = math.tanh %66 : vector<2x32xf32>
    %68 = arith.mulf %61, %67 : vector<2x32xf32>
    %69 = tpu.concatenate %52, %68 in 1 : vector<2x32xf32>, vector<2x32xf32> -> vector<2x64xf32>
    %cst_16 = arith.constant dense<0.000000e+00> : vector<2x256xf32>
    %70 = tpu.matmul %69, %3, %cst_16 {dimension_numbers = #tpu.dot_dimension_numbers<[1], [0], [0], [1], [0, 0, 1, 1], [], []>} : vector<2x64xf32>, vector<64x256xf32>, vector<2x256xf32> -> vector<2x256xf32>
    %71 = vector.broadcast %4 : vector<1x256xf32> to vector<2x256xf32>
    %72 = arith.addf %70, %71 : vector<2x256xf32>
    %73 = vector.extract_strided_slice %72 {offsets = [0, 0], sizes = [2, 128], strides = [1, 1]} : vector<2x256xf32> to vector<2x128xf32>
    %74 = vector.extract_strided_slice %2 {offsets = [4, 0], sizes = [2, 128], strides = [1, 1]} : vector<16x128xf32> to vector<2x128xf32>
    %75 = arith.addf %73, %74 : vector<2x128xf32>
    %76 = arith.negf %75 : vector<2x128xf32>
    %77 = math.exp %76 : vector<2x128xf32>
    %cst_17 = arith.constant 1.000000e+00 : f32
    %78 = vector.broadcast %cst_17 : f32 to vector<2x128xf32>
    %79 = arith.addf %78, %77 : vector<2x128xf32>
    %80 = arith.divf %78, %79 : vector<2x128xf32>
    %81 = vector.extract_strided_slice %80 {offsets = [0, 0], sizes = [2, 32], strides = [1, 1]} : vector<2x128xf32> to vector<2x32xf32>
    %82 = vector.extract_strided_slice %80 {offsets = [0, 32], sizes = [2, 32], strides = [1, 1]} : vector<2x128xf32> to vector<2x32xf32>
    %83 = vector.extract_strided_slice %80 {offsets = [0, 96], sizes = [2, 32], strides = [1, 1]} : vector<2x128xf32> to vector<2x32xf32>
    %84 = vector.extract_strided_slice %75 {offsets = [0, 64], sizes = [2, 32], strides = [1, 1]} : vector<2x128xf32> to vector<2x32xf32>
    %85 = math.tanh %84 : vector<2x32xf32>
    %86 = arith.mulf %82, %50 : vector<2x32xf32>
    %87 = arith.mulf %81, %85 : vector<2x32xf32>
    %88 = arith.addf %86, %87 : vector<2x32xf32>
    %89 = math.tanh %88 : vector<2x32xf32>
    %90 = arith.mulf %83, %89 : vector<2x32xf32>
    %91 = vector.extract_strided_slice %72 {offsets = [0, 128], sizes = [2, 128], strides = [1, 1]} : vector<2x256xf32> to vector<2x128xf32>
    %92 = arith.negf %91 : vector<2x128xf32>
    %93 = math.exp %92 : vector<2x128xf32>
    %cst_18 = arith.constant 1.000000e+00 : f32
    %94 = vector.broadcast %cst_18 : f32 to vector<2x128xf32>
    %95 = arith.addf %94, %93 : vector<2x128xf32>
    %96 = arith.divf %94, %95 : vector<2x128xf32>
    %97 = vector.extract_strided_slice %96 {offsets = [0, 0], sizes = [2, 32], strides = [1, 1]} : vector<2x128xf32> to vector<2x32xf32>
    %98 = vector.extract_strided_slice %96 {offsets = [0, 32], sizes = [2, 32], strides = [1, 1]} : vector<2x128xf32> to vector<2x32xf32>
    %99 = vector.extract_strided_slice %96 {offsets = [0, 96], sizes = [2, 32], strides = [1, 1]} : vector<2x128xf32> to vector<2x32xf32>
    %100 = vector.extract_strided_slice %91 {offsets = [0, 64], sizes = [2, 32], strides = [1, 1]} : vector<2x128xf32> to vector<2x32xf32>
    %101 = math.tanh %100 : vector<2x32xf32>
    %102 = arith.mulf %98, %66 : vector<2x32xf32>
    %103 = arith.mulf %97, %101 : vector<2x32xf32>
    %104 = arith.addf %102, %103 : vector<2x32xf32>
    %105 = math.tanh %104 : vector<2x32xf32>
    %106 = arith.mulf %99, %105 : vector<2x32xf32>
    %107 = tpu.concatenate %90, %106 in 1 : vector<2x32xf32>, vector<2x32xf32> -> vector<2x64xf32>
    %cst_19 = arith.constant dense<0.000000e+00> : vector<2x256xf32>
    %108 = tpu.matmul %107, %3, %cst_19 {dimension_numbers = #tpu.dot_dimension_numbers<[1], [0], [0], [1], [0, 0, 1, 1], [], []>} : vector<2x64xf32>, vector<64x256xf32>, vector<2x256xf32> -> vector<2x256xf32>
    %109 = vector.broadcast %4 : vector<1x256xf32> to vector<2x256xf32>
    %110 = arith.addf %108, %109 : vector<2x256xf32>
    %111 = vector.extract_strided_slice %110 {offsets = [0, 0], sizes = [2, 128], strides = [1, 1]} : vector<2x256xf32> to vector<2x128xf32>
    %112 = vector.extract_strided_slice %2 {offsets = [6, 0], sizes = [2, 128], strides = [1, 1]} : vector<16x128xf32> to vector<2x128xf32>
    %113 = arith.addf %111, %112 : vector<2x128xf32>
    %114 = arith.negf %113 : vector<2x128xf32>
    %115 = math.exp %114 : vector<2x128xf32>
    %cst_20 = arith.constant 1.000000e+00 : f32
    %116 = vector.broadcast %cst_20 : f32 to vector<2x128xf32>
    %117 = arith.addf %116, %115 : vector<2x128xf32>
    %118 = arith.divf %116, %117 : vector<2x128xf32>
    %119 = vector.extract_strided_slice %118 {offsets = [0, 0], sizes = [2, 32], strides = [1, 1]} : vector<2x128xf32> to vector<2x32xf32>
    %120 = vector.extract_strided_slice %118 {offsets = [0, 32], sizes = [2, 32], strides = [1, 1]} : vector<2x128xf32> to vector<2x32xf32>
    %121 = vector.extract_strided_slice %118 {offsets = [0, 96], sizes = [2, 32], strides = [1, 1]} : vector<2x128xf32> to vector<2x32xf32>
    %122 = vector.extract_strided_slice %113 {offsets = [0, 64], sizes = [2, 32], strides = [1, 1]} : vector<2x128xf32> to vector<2x32xf32>
    %123 = math.tanh %122 : vector<2x32xf32>
    %124 = arith.mulf %120, %88 : vector<2x32xf32>
    %125 = arith.mulf %119, %123 : vector<2x32xf32>
    %126 = arith.addf %124, %125 : vector<2x32xf32>
    %127 = math.tanh %126 : vector<2x32xf32>
    %128 = arith.mulf %121, %127 : vector<2x32xf32>
    %129 = vector.extract_strided_slice %110 {offsets = [0, 128], sizes = [2, 128], strides = [1, 1]} : vector<2x256xf32> to vector<2x128xf32>
    %130 = arith.negf %129 : vector<2x128xf32>
    %131 = math.exp %130 : vector<2x128xf32>
    %cst_21 = arith.constant 1.000000e+00 : f32
    %132 = vector.broadcast %cst_21 : f32 to vector<2x128xf32>
    %133 = arith.addf %132, %131 : vector<2x128xf32>
    %134 = arith.divf %132, %133 : vector<2x128xf32>
    %135 = vector.extract_strided_slice %134 {offsets = [0, 0], sizes = [2, 32], strides = [1, 1]} : vector<2x128xf32> to vector<2x32xf32>
    %136 = vector.extract_strided_slice %134 {offsets = [0, 32], sizes = [2, 32], strides = [1, 1]} : vector<2x128xf32> to vector<2x32xf32>
    %137 = vector.extract_strided_slice %134 {offsets = [0, 96], sizes = [2, 32], strides = [1, 1]} : vector<2x128xf32> to vector<2x32xf32>
    %138 = vector.extract_strided_slice %129 {offsets = [0, 64], sizes = [2, 32], strides = [1, 1]} : vector<2x128xf32> to vector<2x32xf32>
    %139 = math.tanh %138 : vector<2x32xf32>
    %140 = arith.mulf %136, %104 : vector<2x32xf32>
    %141 = arith.mulf %135, %139 : vector<2x32xf32>
    %142 = arith.addf %140, %141 : vector<2x32xf32>
    %143 = math.tanh %142 : vector<2x32xf32>
    %144 = arith.mulf %137, %143 : vector<2x32xf32>
    %145 = tpu.concatenate %128, %144 in 1 : vector<2x32xf32>, vector<2x32xf32> -> vector<2x64xf32>
    %cst_22 = arith.constant dense<0.000000e+00> : vector<2x256xf32>
    %146 = tpu.matmul %145, %3, %cst_22 {dimension_numbers = #tpu.dot_dimension_numbers<[1], [0], [0], [1], [0, 0, 1, 1], [], []>} : vector<2x64xf32>, vector<64x256xf32>, vector<2x256xf32> -> vector<2x256xf32>
    %147 = vector.broadcast %4 : vector<1x256xf32> to vector<2x256xf32>
    %148 = arith.addf %146, %147 : vector<2x256xf32>
    %149 = vector.extract_strided_slice %148 {offsets = [0, 0], sizes = [2, 128], strides = [1, 1]} : vector<2x256xf32> to vector<2x128xf32>
    %150 = vector.extract_strided_slice %2 {offsets = [8, 0], sizes = [2, 128], strides = [1, 1]} : vector<16x128xf32> to vector<2x128xf32>
    %151 = arith.addf %149, %150 : vector<2x128xf32>
    %152 = arith.negf %151 : vector<2x128xf32>
    %153 = math.exp %152 : vector<2x128xf32>
    %cst_23 = arith.constant 1.000000e+00 : f32
    %154 = vector.broadcast %cst_23 : f32 to vector<2x128xf32>
    %155 = arith.addf %154, %153 : vector<2x128xf32>
    %156 = arith.divf %154, %155 : vector<2x128xf32>
    %157 = vector.extract_strided_slice %156 {offsets = [0, 0], sizes = [2, 32], strides = [1, 1]} : vector<2x128xf32> to vector<2x32xf32>
    %158 = vector.extract_strided_slice %156 {offsets = [0, 32], sizes = [2, 32], strides = [1, 1]} : vector<2x128xf32> to vector<2x32xf32>
    %159 = vector.extract_strided_slice %156 {offsets = [0, 96], sizes = [2, 32], strides = [1, 1]} : vector<2x128xf32> to vector<2x32xf32>
    %160 = vector.extract_strided_slice %151 {offsets = [0, 64], sizes = [2, 32], strides = [1, 1]} : vector<2x128xf32> to vector<2x32xf32>
    %161 = math.tanh %160 : vector<2x32xf32>
    %162 = arith.mulf %158, %126 : vector<2x32xf32>
    %163 = arith.mulf %157, %161 : vector<2x32xf32>
    %164 = arith.addf %162, %163 : vector<2x32xf32>
    %165 = math.tanh %164 : vector<2x32xf32>
    %166 = arith.mulf %159, %165 : vector<2x32xf32>
    %167 = vector.extract_strided_slice %148 {offsets = [0, 128], sizes = [2, 128], strides = [1, 1]} : vector<2x256xf32> to vector<2x128xf32>
    %168 = arith.negf %167 : vector<2x128xf32>
    %169 = math.exp %168 : vector<2x128xf32>
    %cst_24 = arith.constant 1.000000e+00 : f32
    %170 = vector.broadcast %cst_24 : f32 to vector<2x128xf32>
    %171 = arith.addf %170, %169 : vector<2x128xf32>
    %172 = arith.divf %170, %171 : vector<2x128xf32>
    %173 = vector.extract_strided_slice %172 {offsets = [0, 0], sizes = [2, 32], strides = [1, 1]} : vector<2x128xf32> to vector<2x32xf32>
    %174 = vector.extract_strided_slice %172 {offsets = [0, 32], sizes = [2, 32], strides = [1, 1]} : vector<2x128xf32> to vector<2x32xf32>
    %175 = vector.extract_strided_slice %172 {offsets = [0, 96], sizes = [2, 32], strides = [1, 1]} : vector<2x128xf32> to vector<2x32xf32>
    %176 = vector.extract_strided_slice %167 {offsets = [0, 64], sizes = [2, 32], strides = [1, 1]} : vector<2x128xf32> to vector<2x32xf32>
    %177 = math.tanh %176 : vector<2x32xf32>
    %178 = arith.mulf %174, %142 : vector<2x32xf32>
    %179 = arith.mulf %173, %177 : vector<2x32xf32>
    %180 = arith.addf %178, %179 : vector<2x32xf32>
    %181 = math.tanh %180 : vector<2x32xf32>
    %182 = arith.mulf %175, %181 : vector<2x32xf32>
    %183 = tpu.concatenate %166, %182 in 1 : vector<2x32xf32>, vector<2x32xf32> -> vector<2x64xf32>
    %cst_25 = arith.constant dense<0.000000e+00> : vector<2x256xf32>
    %184 = tpu.matmul %183, %3, %cst_25 {dimension_numbers = #tpu.dot_dimension_numbers<[1], [0], [0], [1], [0, 0, 1, 1], [], []>} : vector<2x64xf32>, vector<64x256xf32>, vector<2x256xf32> -> vector<2x256xf32>
    %185 = vector.broadcast %4 : vector<1x256xf32> to vector<2x256xf32>
    %186 = arith.addf %184, %185 : vector<2x256xf32>
    %187 = vector.extract_strided_slice %186 {offsets = [0, 0], sizes = [2, 128], strides = [1, 1]} : vector<2x256xf32> to vector<2x128xf32>
    %188 = vector.extract_strided_slice %2 {offsets = [10, 0], sizes = [2, 128], strides = [1, 1]} : vector<16x128xf32> to vector<2x128xf32>
    %189 = arith.addf %187, %188 : vector<2x128xf32>
    %190 = arith.negf %189 : vector<2x128xf32>
    %191 = math.exp %190 : vector<2x128xf32>
    %cst_26 = arith.constant 1.000000e+00 : f32
    %192 = vector.broadcast %cst_26 : f32 to vector<2x128xf32>
    %193 = arith.addf %192, %191 : vector<2x128xf32>
    %194 = arith.divf %192, %193 : vector<2x128xf32>
    %195 = vector.extract_strided_slice %194 {offsets = [0, 0], sizes = [2, 32], strides = [1, 1]} : vector<2x128xf32> to vector<2x32xf32>
    %196 = vector.extract_strided_slice %194 {offsets = [0, 32], sizes = [2, 32], strides = [1, 1]} : vector<2x128xf32> to vector<2x32xf32>
    %197 = vector.extract_strided_slice %194 {offsets = [0, 96], sizes = [2, 32], strides = [1, 1]} : vector<2x128xf32> to vector<2x32xf32>
    %198 = vector.extract_strided_slice %189 {offsets = [0, 64], sizes = [2, 32], strides = [1, 1]} : vector<2x128xf32> to vector<2x32xf32>
    %199 = math.tanh %198 : vector<2x32xf32>
    %200 = arith.mulf %196, %164 : vector<2x32xf32>
    %201 = arith.mulf %195, %199 : vector<2x32xf32>
    %202 = arith.addf %200, %201 : vector<2x32xf32>
    %203 = math.tanh %202 : vector<2x32xf32>
    %204 = arith.mulf %197, %203 : vector<2x32xf32>
    %205 = vector.extract_strided_slice %186 {offsets = [0, 128], sizes = [2, 128], strides = [1, 1]} : vector<2x256xf32> to vector<2x128xf32>
    %206 = arith.negf %205 : vector<2x128xf32>
    %207 = math.exp %206 : vector<2x128xf32>
    %cst_27 = arith.constant 1.000000e+00 : f32
    %208 = vector.broadcast %cst_27 : f32 to vector<2x128xf32>
    %209 = arith.addf %208, %207 : vector<2x128xf32>
    %210 = arith.divf %208, %209 : vector<2x128xf32>
    %211 = vector.extract_strided_slice %210 {offsets = [0, 0], sizes = [2, 32], strides = [1, 1]} : vector<2x128xf32> to vector<2x32xf32>
    %212 = vector.extract_strided_slice %210 {offsets = [0, 32], sizes = [2, 32], strides = [1, 1]} : vector<2x128xf32> to vector<2x32xf32>
    %213 = vector.extract_strided_slice %210 {offsets = [0, 96], sizes = [2, 32], strides = [1, 1]} : vector<2x128xf32> to vector<2x32xf32>
    %214 = vector.extract_strided_slice %205 {offsets = [0, 64], sizes = [2, 32], strides = [1, 1]} : vector<2x128xf32> to vector<2x32xf32>
    %215 = math.tanh %214 : vector<2x32xf32>
    %216 = arith.mulf %212, %180 : vector<2x32xf32>
    %217 = arith.mulf %211, %215 : vector<2x32xf32>
    %218 = arith.addf %216, %217 : vector<2x32xf32>
    %219 = math.tanh %218 : vector<2x32xf32>
    %220 = arith.mulf %213, %219 : vector<2x32xf32>
    %221 = tpu.concatenate %204, %220 in 1 : vector<2x32xf32>, vector<2x32xf32> -> vector<2x64xf32>
    %cst_28 = arith.constant dense<0.000000e+00> : vector<2x256xf32>
    %222 = tpu.matmul %221, %3, %cst_28 {dimension_numbers = #tpu.dot_dimension_numbers<[1], [0], [0], [1], [0, 0, 1, 1], [], []>} : vector<2x64xf32>, vector<64x256xf32>, vector<2x256xf32> -> vector<2x256xf32>
    %223 = vector.broadcast %4 : vector<1x256xf32> to vector<2x256xf32>
    %224 = arith.addf %222, %223 : vector<2x256xf32>
    %225 = vector.extract_strided_slice %224 {offsets = [0, 0], sizes = [2, 128], strides = [1, 1]} : vector<2x256xf32> to vector<2x128xf32>
    %226 = vector.extract_strided_slice %2 {offsets = [12, 0], sizes = [2, 128], strides = [1, 1]} : vector<16x128xf32> to vector<2x128xf32>
    %227 = arith.addf %225, %226 : vector<2x128xf32>
    %228 = arith.negf %227 : vector<2x128xf32>
    %229 = math.exp %228 : vector<2x128xf32>
    %cst_29 = arith.constant 1.000000e+00 : f32
    %230 = vector.broadcast %cst_29 : f32 to vector<2x128xf32>
    %231 = arith.addf %230, %229 : vector<2x128xf32>
    %232 = arith.divf %230, %231 : vector<2x128xf32>
    %233 = vector.extract_strided_slice %232 {offsets = [0, 0], sizes = [2, 32], strides = [1, 1]} : vector<2x128xf32> to vector<2x32xf32>
    %234 = vector.extract_strided_slice %232 {offsets = [0, 32], sizes = [2, 32], strides = [1, 1]} : vector<2x128xf32> to vector<2x32xf32>
    %235 = vector.extract_strided_slice %232 {offsets = [0, 96], sizes = [2, 32], strides = [1, 1]} : vector<2x128xf32> to vector<2x32xf32>
    %236 = vector.extract_strided_slice %227 {offsets = [0, 64], sizes = [2, 32], strides = [1, 1]} : vector<2x128xf32> to vector<2x32xf32>
    %237 = math.tanh %236 : vector<2x32xf32>
    %238 = arith.mulf %234, %202 : vector<2x32xf32>
    %239 = arith.mulf %233, %237 : vector<2x32xf32>
    %240 = arith.addf %238, %239 : vector<2x32xf32>
    %241 = math.tanh %240 : vector<2x32xf32>
    %242 = arith.mulf %235, %241 : vector<2x32xf32>
    %243 = vector.extract_strided_slice %224 {offsets = [0, 128], sizes = [2, 128], strides = [1, 1]} : vector<2x256xf32> to vector<2x128xf32>
    %244 = arith.negf %243 : vector<2x128xf32>
    %245 = math.exp %244 : vector<2x128xf32>
    %cst_30 = arith.constant 1.000000e+00 : f32
    %246 = vector.broadcast %cst_30 : f32 to vector<2x128xf32>
    %247 = arith.addf %246, %245 : vector<2x128xf32>
    %248 = arith.divf %246, %247 : vector<2x128xf32>
    %249 = vector.extract_strided_slice %248 {offsets = [0, 0], sizes = [2, 32], strides = [1, 1]} : vector<2x128xf32> to vector<2x32xf32>
    %250 = vector.extract_strided_slice %248 {offsets = [0, 32], sizes = [2, 32], strides = [1, 1]} : vector<2x128xf32> to vector<2x32xf32>
    %251 = vector.extract_strided_slice %248 {offsets = [0, 96], sizes = [2, 32], strides = [1, 1]} : vector<2x128xf32> to vector<2x32xf32>
    %252 = vector.extract_strided_slice %243 {offsets = [0, 64], sizes = [2, 32], strides = [1, 1]} : vector<2x128xf32> to vector<2x32xf32>
    %253 = math.tanh %252 : vector<2x32xf32>
    %254 = arith.mulf %250, %218 : vector<2x32xf32>
    %255 = arith.mulf %249, %253 : vector<2x32xf32>
    %256 = arith.addf %254, %255 : vector<2x32xf32>
    %257 = math.tanh %256 : vector<2x32xf32>
    %258 = arith.mulf %251, %257 : vector<2x32xf32>
    %259 = tpu.concatenate %242, %258 in 1 : vector<2x32xf32>, vector<2x32xf32> -> vector<2x64xf32>
    %cst_31 = arith.constant dense<0.000000e+00> : vector<2x256xf32>
    %260 = tpu.matmul %259, %3, %cst_31 {dimension_numbers = #tpu.dot_dimension_numbers<[1], [0], [0], [1], [0, 0, 1, 1], [], []>} : vector<2x64xf32>, vector<64x256xf32>, vector<2x256xf32> -> vector<2x256xf32>
    %261 = vector.broadcast %4 : vector<1x256xf32> to vector<2x256xf32>
    %262 = arith.addf %260, %261 : vector<2x256xf32>
    %263 = vector.extract_strided_slice %262 {offsets = [0, 0], sizes = [2, 128], strides = [1, 1]} : vector<2x256xf32> to vector<2x128xf32>
    %264 = vector.extract_strided_slice %2 {offsets = [14, 0], sizes = [2, 128], strides = [1, 1]} : vector<16x128xf32> to vector<2x128xf32>
    %265 = arith.addf %263, %264 : vector<2x128xf32>
    %266 = arith.negf %265 : vector<2x128xf32>
    %267 = math.exp %266 : vector<2x128xf32>
    %cst_32 = arith.constant 1.000000e+00 : f32
    %268 = vector.broadcast %cst_32 : f32 to vector<2x128xf32>
    %269 = arith.addf %268, %267 : vector<2x128xf32>
    %270 = arith.divf %268, %269 : vector<2x128xf32>
    %271 = vector.extract_strided_slice %270 {offsets = [0, 0], sizes = [2, 32], strides = [1, 1]} : vector<2x128xf32> to vector<2x32xf32>
    %272 = vector.extract_strided_slice %270 {offsets = [0, 32], sizes = [2, 32], strides = [1, 1]} : vector<2x128xf32> to vector<2x32xf32>
    %273 = vector.extract_strided_slice %270 {offsets = [0, 96], sizes = [2, 32], strides = [1, 1]} : vector<2x128xf32> to vector<2x32xf32>
    %274 = vector.extract_strided_slice %265 {offsets = [0, 64], sizes = [2, 32], strides = [1, 1]} : vector<2x128xf32> to vector<2x32xf32>
    %275 = math.tanh %274 : vector<2x32xf32>
    %276 = arith.mulf %272, %240 : vector<2x32xf32>
    %277 = arith.mulf %271, %275 : vector<2x32xf32>
    %278 = arith.addf %276, %277 : vector<2x32xf32>
    %279 = math.tanh %278 : vector<2x32xf32>
    %280 = arith.mulf %273, %279 : vector<2x32xf32>
    %281 = vector.extract_strided_slice %262 {offsets = [0, 128], sizes = [2, 128], strides = [1, 1]} : vector<2x256xf32> to vector<2x128xf32>
    %282 = arith.negf %281 : vector<2x128xf32>
    %283 = math.exp %282 : vector<2x128xf32>
    %cst_33 = arith.constant 1.000000e+00 : f32
    %284 = vector.broadcast %cst_33 : f32 to vector<2x128xf32>
    %285 = arith.addf %284, %283 : vector<2x128xf32>
    %286 = arith.divf %284, %285 : vector<2x128xf32>
    %287 = vector.extract_strided_slice %286 {offsets = [0, 0], sizes = [2, 32], strides = [1, 1]} : vector<2x128xf32> to vector<2x32xf32>
    %288 = vector.extract_strided_slice %286 {offsets = [0, 32], sizes = [2, 32], strides = [1, 1]} : vector<2x128xf32> to vector<2x32xf32>
    %289 = vector.extract_strided_slice %286 {offsets = [0, 96], sizes = [2, 32], strides = [1, 1]} : vector<2x128xf32> to vector<2x32xf32>
    %290 = vector.extract_strided_slice %281 {offsets = [0, 64], sizes = [2, 32], strides = [1, 1]} : vector<2x128xf32> to vector<2x32xf32>
    %291 = math.tanh %290 : vector<2x32xf32>
    %292 = arith.mulf %288, %256 : vector<2x32xf32>
    %293 = arith.mulf %287, %291 : vector<2x32xf32>
    %294 = arith.addf %292, %293 : vector<2x32xf32>
    %295 = math.tanh %294 : vector<2x32xf32>
    %296 = arith.mulf %289, %295 : vector<2x32xf32>
    %297 = tpu.concatenate %280, %296 in 1 : vector<2x32xf32>, vector<2x32xf32> -> vector<2x64xf32>
    %cst_34 = arith.constant dense<0.000000e+00> : vector<2x256xf32>
    %298 = tpu.matmul %297, %3, %cst_34 {dimension_numbers = #tpu.dot_dimension_numbers<[1], [0], [0], [1], [0, 0, 1, 1], [], []>} : vector<2x64xf32>, vector<64x256xf32>, vector<2x256xf32> -> vector<2x256xf32>
    %299 = vector.broadcast %4 : vector<1x256xf32> to vector<2x256xf32>
    %300 = arith.addf %298, %299 : vector<2x256xf32>
    %301 = vector.extract_strided_slice %300 {offsets = [0, 128], sizes = [2, 128], strides = [1, 1]} : vector<2x256xf32> to vector<2x128xf32>
    %302 = arith.negf %301 : vector<2x128xf32>
    %303 = math.exp %302 : vector<2x128xf32>
    %cst_35 = arith.constant 1.000000e+00 : f32
    %304 = vector.broadcast %cst_35 : f32 to vector<2x128xf32>
    %305 = arith.addf %304, %303 : vector<2x128xf32>
    %306 = arith.divf %304, %305 : vector<2x128xf32>
    %307 = vector.extract_strided_slice %306 {offsets = [0, 0], sizes = [2, 32], strides = [1, 1]} : vector<2x128xf32> to vector<2x32xf32>
    %308 = vector.extract_strided_slice %306 {offsets = [0, 32], sizes = [2, 32], strides = [1, 1]} : vector<2x128xf32> to vector<2x32xf32>
    %309 = vector.extract_strided_slice %306 {offsets = [0, 96], sizes = [2, 32], strides = [1, 1]} : vector<2x128xf32> to vector<2x32xf32>
    %310 = vector.extract_strided_slice %301 {offsets = [0, 64], sizes = [2, 32], strides = [1, 1]} : vector<2x128xf32> to vector<2x32xf32>
    %311 = math.tanh %310 : vector<2x32xf32>
    %312 = arith.mulf %308, %294 : vector<2x32xf32>
    %313 = arith.mulf %307, %311 : vector<2x32xf32>
    %314 = arith.addf %312, %313 : vector<2x32xf32>
    %315 = math.tanh %314 : vector<2x32xf32>
    %316 = arith.mulf %309, %315 : vector<2x32xf32>
    %317 = tpu.concatenate %280, %316 in 0 : vector<2x32xf32>, vector<2x32xf32> -> vector<4x32xf32>
    %c0_36 = arith.constant 0 : index
    %c0_37 = arith.constant 0 : index
    %318 = vector.load %arg4[%c0_36, %c0_37] : memref<32x4xf32, #tpu.memory_space<vmem>>, vector<32x4xf32>
    %cst_38 = arith.constant dense<0.000000e+00> : vector<4x4xf32>
    %319 = tpu.matmul %317, %318, %cst_38 {dimension_numbers = #tpu.dot_dimension_numbers<[1], [0], [0], [1], [0, 0, 1, 1], [], []>} : vector<4x32xf32>, vector<32x4xf32>, vector<4x4xf32> -> vector<4x4xf32>
    %c0_39 = arith.constant 0 : index
    %c0_40 = arith.constant 0 : index
    %320 = vector.load %arg5[%c0_39, %c0_40] : memref<1x4xf32, #tpu.memory_space<vmem>>, vector<1x4xf32>
    %321 = vector.broadcast %320 : vector<1x4xf32> to vector<4x4xf32>
    %322 = arith.addf %319, %321 : vector<4x4xf32>
    %c0_41 = arith.constant 0 : index
    %c0_42 = arith.constant 0 : index
    %323 = vector.load %arg6[%c0_41, %c0_42] : memref<4x4xf32, #tpu.memory_space<vmem>>, vector<4x4xf32>
    tpu.vector_store %arg6[%c0_41, %c0_42], %322 {strides = array<i32>} : memref<4x4xf32, #tpu.memory_space<vmem>>, vector<4x4xf32>,
    return
  }
}

</mosaic_0001>

<bundles_post_ra>
// kernel: lstm_model_forward.1
= control target key start
LH: loop header
LB: loop body
LE: loop exit
PB: predicated region body
PF: predicated region fallthrough
CT: control target
= control target key end

     0   :  { %11 = vsyncpa [#allocation3], 0  ;;  %s2095_s0 = inlined_call_operand.vmem [shape: f32[16,8], index: 0, kind: input, shape index: {}]   ;;  %s2096_s1 = inlined_call_operand.vmem [shape: f32[8,128], index: 1, kind: input, shape index: {}]   ;;  %s2097_s2 = inlined_call_operand.hbm [shape: f32[64,256], index: 2, kind: input, shape index: {}]   ;;  %s2098_s3 = inlined_call_operand.vmem [shape: f32[1,256], index: 3, kind: input, shape index: {}]   ;;  %s2099_s4 = inlined_call_operand.vmem [shape: f32[32,4], index: 4, kind: input, shape index: {}]   ;;  %s2100_s5 = inlined_call_operand.vmem [shape: f32[1,4], index: 5, kind: input, shape index: {}]   ;;  %s2101_s6 = inlined_call_operand.hbm [shape: f32[4,4], index: 6, kind: output, shape index: {}]  }
   0x1   :  { %12 = vsyncpa [#allocation4], 0  ;;  %s1786_s21 = smov [#allocation2]   ;;  %s1738_s25 = scalar_lea.hbm %s2097_s2, 2048 }
   0x2   :  { %s22_s22 = sshll.u32 %s1786_s21, 4  ;;  %p1739_p0 = scmp.ne.s32.totalorder %s2097_s2, %s1738_s25  ;;  %s23_s22 = int_to_ptr.vmem [resolvable:$true] %s22_s22 }
   0x3   :  { %p1742_p1 = scmp.lt.u32.totalorder %s1738_s25, %s2097_s2 }
   0x5   :  { %p1744_p2 = pnand %p1742_p1, %p1739_p0 }
   0x7   :  { %1747 = shalt.err (!%p1744_p2)
}
   0x8   :  { %s1748_s30 = scalar_lea.vmem %s23_s22, 2048  ;;  %p1753_p4 = scmp.lt.s32.totalorder %s23_s22, %s23_s22 }
   0x9   :  { %p1749_p3 = scmp.ne.s32.totalorder %s23_s22, %s1748_s30  ;;  %p1754_p5 = scmp.lt.s32.totalorder %s1748_s30, %s1748_s30 }
   0xb   :  { %p1755_p6 = por %p1754_p5, %p1753_p4 }
   0xd   :  { %p1756_p7 = pnand %p1755_p6, %p1749_p3 }
   0xf   :  { %1759 = shalt.err (!%p1756_p7)
}
  0x10   :  { %s1787_s7 = smov 256   ;;  %s1788_s8 = smov 16  }
  0x11   :  { %28 = dma.hbm_to_vmem [thread:$0]  %s2097_s2, 2048, %s23_s22, [#allocation3], %s1787_s7, %s1787_s7, %s1788_s8  }
  0x12   :  { %1782 = dma.done.wait [#allocation3], 2048  }
  0x13   :  { %1783 = vsyncadd [#allocation3], 4294965248  ;;  %v1789_v0 = vmov 0.0   ;;  %v124_v1 = vld [vmem:[#allocation2 + $0x8] sm:$0xff]  ;;  %v126_v2 = vld [vmem:[#allocation2 + $0x18] sm:$0xff]  ;;  %vm41_vm0 = vcmask 64512   ;;  %v141_v28 = vlaneseq }
  0x14   :  { %219 = vmatprep.mubr.f32.mxu1 %v1789_v0  ;;  %v123_v3 = vld [vmem:[#allocation2] sm:$0xff]  ;;  %v1843_v4 = vpack.c.bf16 %v126_v2, %v124_v1  ;;  %v125_v5 = vld [vmem:[#allocation2 + $0x10] sm:$0xff]  ;;  %v128_v6 = vld [vmem:[#allocation2 + $0x28] sm:$0xff]  ;;  %s1790_s16 = smov 64   ;;  %vm254_vm1 = vcmask 261120   ;;  %vm151_vm2 = vcmask 523264  }
  0x15   :  { %v130_v7 = vld [vmem:[#allocation2 + $0x38] sm:$0xff]  ;;  %v1845_v8 = vpack.c.bf16 %v125_v5, %v123_v3  ;;  %v127_v10 = vld [vmem:[#allocation2 + $0x20] sm:$0xff]  ;;  %v129_v11 = vld [vmem:[#allocation2 + $0x30] sm:$0xff]  ;;  %v142_v30 = vshrl.u32 %v141_v28, 7  ;;  %vm1793_vm3 = vmmov 0   ;;  %vm1294_vm4 = vcmask 1041408  }
  0x16   :  { %v1847_v9 = vpack.c.bf16 %v130_v7, %v128_v6  ;;  %v132_v12 = vld [vmem:[#allocation2 + $0x48] sm:$0xff]  ;;  %1452 = vmatprep.subr.bf16.mxu1 %v1843_v4  ;;  %v134_v13 = vld [vmem:[#allocation2 + $0x58] sm:$0xff]  ;;  %v1851_v14 = vpack.c.bf16 %v129_v11, %v127_v10  ;;  %v131_v15 = vld [vmem:[#allocation2 + $0x40] sm:$0xff]  ;;  %s1794_s26 = smov [#allocation5]   ;;  %vm1382_vm5 = vcmask 27648  }
  0x17   :  { %1454 = vmatpush1.bf16.msra.mxu1 %v1845_v8  ;;  %v1854_v16 = vpack.c.bf16 %v134_v13, %v132_v12  ;;  %v133_v17 = vld [vmem:[#allocation2 + $0x50] sm:$0xff]  ;;  %v40_v18 = vld [vmem:[%s2096_s1] sm:$0xff]  ;;  %v136_v20 = vld [vmem:[#allocation2 + $0x68] sm:$0xff]  ;;  %v143_v32 = vsub.s32 0, %v142_v30  ;;  %v147_v54 = vsub.s32 1, %v142_v30  ;;  %s1390_s27 = sshll.u32 %s1794_s26, 4  ;;  %s1391_s27 = int_to_ptr.vmem [resolvable:$true] %s1390_s27 }
  0x18   :  { %1456 = vmatprep.subr.bf16.mxu1 %v1847_v9  ;;  %v38_v19 = vld [vmem:[%s2095_s0] sm:$0xff]  ;;  %v138_v21 = vld [vmem:[#allocation2 + $0x78] sm:$0xff]  ;;  %1435 = vmatprep.subr.mxu0 %v40_v18  ;;  %v39_v22 = vld [vmem:[%s2095_s0 + $0x8] sm:$0xff]  ;;  %v1867_v23 = vpack.c.bf16 %v133_v17, %v131_v15  ;;  %s1760_s28 = scalar_lea.vmem %s1391_s27, 64  ;;  %p1765_p9 = scmp.lt.s32.totalorder %s1391_s27, %s1391_s27 }
  0x19   :  { %1437 = vmatprep.mubr.msk.f32.mxu0 %vm41_vm0, %v38_v19  ;;  %1436 = vmatpush3.msra.mxu0 %v40_v18  ;;  %v1871_v24 = vpack.c.bf16 %v138_v21, %v136_v20  ;;  %v135_v25 = vld [vmem:[#allocation2 + $0x60] sm:$0xff]  ;;  %v137_v26 = vld [vmem:[#allocation2 + $0x70] sm:$0xff]  ;;  %p1761_p8 = scmp.ne.s32.totalorder %s1391_s27, %s1760_s28  ;;  %p1766_p10 = scmp.lt.s32.totalorder %s1760_s28, %s1760_s28 }
  0x1a   :  { %1438 = vmatmul.mubr.msk.f32.vlgmr.msra.gmra.mrb[0].mxu0 %vm41_vm0, %v39_v22  ;;  %1468 = vmatprep.subr.bf16.mxu0 %v1843_v4  ;;  %v1878_v27 = vpack.c.bf16 %v137_v26, %v135_v25  ;;  %v139_v33 = vld [vmem:[%s2098_s3] sm:$0x3]  ;;  %s1791_s3 = smov 32  }
  0x1b   :  { %1458 = vmatpush1.bf16.msra.mxu1 %v1851_v14  ;;  %1470 = vmatpush1.bf16.msra.mxu0 %v1845_v8  ;;  %v1906_v34 = vrot.slane %v139_v33, %v143_v32  ;;  %v1925_v55 = vrot.slane %v139_v33, %v147_v54  ;;  %p1767_p11 = por %p1766_p10, %p1765_p9 }
  0x1c   :  { %1460 = vmatprep.subr.bf16.mxu1 %v1854_v16  ;;  %323 = vmatprep.mubr.f32.mxu0 %v1789_v0 }
  0x1d   :  { %1472 = vmatprep.subr.bf16.mxu0 %v1847_v9  ;;  %p1768_p12 = pnand %p1767_p11, %p1761_p8 }
  0x1f   :  { %1462 = vmatpush1.bf16.msra.mxu1 %v1867_v23  ;;  %1474 = vmatpush1.bf16.msra.mxu0 %v1851_v14 }
  0x20   :  { %1464 = vmatprep.subr.bf16.mxu1 %v1871_v24  ;;  %1476 = vmatprep.subr.bf16.mxu0 %v1854_v16 }
  0x23   :  { %1466 = vmatpush1.bf16.msra.mxu1 %v1878_v27  ;;  %1478 = vmatpush1.bf16.msra.mxu0 %v1867_v23 }
  0x24   :  { %1484 = vmatprep.subr.bf16.mxu1 %v1843_v4  ;;  %1480 = vmatprep.subr.bf16.mxu0 %v1871_v24 }
  0x26   :  { %220 = vmatmul.mubr.f32.vlgmr.msra.gmra.mrb[0].mxu1 %v1789_v0 }
  0x27   :  { %1486 = vmatpush1.bf16.msra.mxu1 %v1845_v8  ;;  %458 = vmatprep.mubr.f32.mxu1 %v1789_v0 }
  0x28   :  { %1488 = vmatprep.subr.bf16.mxu1 %v1847_v9  ;;  %1482 = vmatpush1.bf16.msra.mxu0 %v1878_v27 }
  0x29   :  { %1500 = vmatprep.subr.bf16.mxu0 %v1843_v4 }
  0x2b   :  { %1490 = vmatpush1.bf16.msra.mxu1 %v1851_v14 }
  0x2c   :  { %1492 = vmatprep.subr.bf16.mxu1 %v1854_v16 }
  0x2f   :  { %1494 = vmatpush1.bf16.msra.mxu1 %v1867_v23 }
  0x30   :  { %1496 = vmatprep.subr.bf16.mxu1 %v1871_v24 }
  0x33   :  { %1498 = vmatpush1.bf16.msra.mxu1 %v1878_v27 }
  0x34   :  { %1516 = vmatprep.subr.bf16.mxu1 %v1843_v4 }
  0xed   :  { %v1899_v29 = vpop.f32.mrb[0].mxu0 }
  0xee   :  { %v1901_v31 = vpop.f32.mrb[1].mxu0 }
  0xef   :  { %v331_v58 = vrot.slane %v1901_v31, 2 }
  0xf9   :  { %v221_v35 = vpop.f32.mrb[0].mxu1 }
  0xfa   :  { %v222_v36 = vadd.f32 %v221_v35, %v1906_v34  ;;  %v223_v37 = vpop.f32.mrb[1].mxu1 }
  0xfc   :  { %v225_v38 = vadd.f32 %v222_v36, %v1901_v31 }
  0xfe   :  { %1610 = vtanh.f32 %v225_v38  ;;  %v1401_v40 = vmul.f32 -1.442695, %v225_v38 }
 0x100   :  { %1612 = vpow2.f32 %v1401_v40 }
 0x108   :  { %v1611_v39 = vpop.eup %1610 }
 0x109   :  { %235 = vrot.lane.b32.xlu0 %v1611_v39, %s1790_s16 }
 0x10a   :  { %v1613_v41 = vpop.eup %1612 }
 0x10b   :  { %v229_v42 = vadd.f32 1.0, %v1613_v41  ;;  %v465_v41 = vrot.slane %v1901_v31, 4 }
 0x10d   :  { %1614 = vrcp.f32 %v229_v42 }
 0x117   :  { %v1615_v43 = vpop.eup %1614 }
 0x118   :  { %v233_v46 = vmul.f32 0.0, %v1615_v43 }
 0x17b   :  { %v236_v44 = vpop.permute.xlu0 %235 }
 0x17c   :  { %v238_v45 = vmul.f32 %v1615_v43, %v236_v44 }
 0x17e   :  { %240 = vrot.lane.b32.xlu0 %v238_v45, %s1791_s3 }
 0x1f0   :  { %v241_v47 = vpop.permute.xlu0 %240 }
 0x1f1   :  { %v243_v48 = vadd.f32 %v241_v47, %v233_v46 }
 0x1f3   :  { %1616 = vtanh.f32 %v243_v48 }
 0x1fd   :  { %v1617_v49 = vpop.eup %1616 }
 0x1fe   :  { %246 = vrot.lane.b32.xlu1 %v1617_v49, %s1790_s16 }
 0x270   :  { %v247_v50 = vpop.permute.xlu1 %246 }
 0x271   :  { %v249_v51 = vmul.f32 %v1615_v43, %v247_v50 }
 0x273   :  { %251 = vrot.lane.b32.xlu1 %v249_v51, %s1791_s3 }
 0x2e5   :  { %v252_v52 = vpop.permute.xlu1 %251 }
 0x2e6   :  { %v255_v53 = vsel %vm254_vm1, %v252_v52, 0.0 }
 0x2e7   :  { %1402 = vmatmul.mubr.msk.f32.vlgmr.msra.gmra.mrb[2].mxu0 %vm151_vm2, %v255_v53 }
 0x2e8   :  { %1502 = vmatpush1.bf16.msra.mxu0 %v1845_v8  ;;  %592 = vmatprep.mubr.f32.mxu0 %v1789_v0 }
 0x2e9   :  { %1504 = vmatprep.subr.bf16.mxu0 %v1847_v9 }
 0x2ec   :  { %1506 = vmatpush1.bf16.msra.mxu0 %v1851_v14 }
 0x2ed   :  { %1508 = vmatprep.subr.bf16.mxu0 %v1854_v16 }
 0x2f0   :  { %1510 = vmatpush1.bf16.msra.mxu0 %v1867_v23 }
 0x2f1   :  { %1512 = vmatprep.subr.bf16.mxu0 %v1871_v24 }
 0x2f4   :  { %1514 = vmatpush1.bf16.msra.mxu0 %v1878_v27 }
 0x2f5   :  { %1532 = vmatprep.subr.bf16.mxu0 %v1843_v4 }
 0x3ba   :  { %v325_v56 = vpop.f32.mrb[2].mxu0 }
 0x3bb   :  { %v326_v57 = vadd.f32 %v325_v56, %v1906_v34  ;;  %v327_v59 = vpop.f32.mrb[3].mxu0 }
 0x3bc   :  { %v328_v60 = vadd.f32 %v327_v59, %v1925_v55 }
 0x3bd   :  { %v333_v61 = vadd.f32 %v331_v58, %v326_v57 }
 0x3be   :  { %1618 = vtanh.f32 %v328_v60  ;;  %v1404_v1 = vmul.f32 -1.442695, %v328_v60 }
 0x3bf   :  { %1620 = vtanh.f32 %v333_v61  ;;  %v1403_v2 = vmul.f32 -1.442695, %v333_v61 }
 0x3c0   :  { %1622 = vpow2.f32 %v1404_v1 }
 0x3c1   :  { %1624 = vpow2.f32 %v1403_v2 }
 0x3c8   :  { %v1619_v62 = vpop.eup %1618 }
 0x3c9   :  { %v1621_v63 = vpop.eup %1620  ;;  %367 = vrot.lane.b32.xlu1 %v1619_v62, %s1790_s16 }
 0x3ca   :  { %343 = vrot.lane.b32.xlu0 %v1621_v63, %s1790_s16  ;;  %v1623_v3 = vpop.eup %1622 }
 0x3cb   :  { %v1625_v5 = vpop.eup %1624  ;;  %v361_v6 = vadd.f32 1.0, %v1623_v3 }
 0x3cc   :  { %v337_v7 = vadd.f32 1.0, %v1625_v5 }
 0x3cd   :  { %1626 = vrcp.f32 %v361_v6 }
 0x3ce   :  { %1628 = vrcp.f32 %v337_v7 }
 0x3d7   :  { %v1627_v10 = vpop.eup %1626 }
 0x3d8   :  { %v1629_v12 = vpop.eup %1628  ;;  %v365_v18 = vmul.f32 0.0, %v1627_v10 }
 0x3d9   :  { %v341_v20 = vmul.f32 %v1629_v12, %v243_v48 }
 0x43b   :  { %v368_v11 = vpop.permute.xlu1 %367 }
 0x43c   :  { %v370_v13 = vmul.f32 %v1627_v10, %v368_v11  ;;  %v344_v15 = vpop.permute.xlu0 %343 }
 0x43d   :  { %v346_v17 = vmul.f32 %v1629_v12, %v344_v15 }
 0x43e   :  { %372 = vrot.lane.b32.xlu1 %v370_v13, %s1791_s3 }
 0x43f   :  { %348 = vrot.lane.b32.xlu0 %v346_v17, %s1791_s3 }
 0x4b0   :  { %v373_v19 = vpop.permute.xlu1 %372 }
 0x4b1   :  { %v375_v21 = vadd.f32 %v373_v19, %v365_v18  ;;  %v349_v22 = vpop.permute.xlu0 %348  ;;  %v599_v19 = vrot.slane %v1901_v31, 6 }
 0x4b2   :  { %v351_v25 = vadd.f32 %v349_v22, %v341_v20 }
 0x4b3   :  { %1630 = vtanh.f32 %v375_v21 }
 0x4b4   :  { %1632 = vtanh.f32 %v351_v25 }
 0x4bd   :  { %v1631_v26 = vpop.eup %1630 }
 0x4be   :  { %v1633_v28 = vpop.eup %1632  ;;  %378 = vrot.lane.b32.xlu1 %v1631_v26, %s1790_s16 }
 0x4bf   :  { %354 = vrot.lane.b32.xlu0 %v1633_v28, %s1790_s16 }
 0x530   :  { %v379_v30 = vpop.permute.xlu1 %378 }
 0x531   :  { %v381_v32 = vmul.f32 %v1627_v10, %v379_v30  ;;  %v355_v33 = vpop.permute.xlu0 %354 }
 0x532   :  { %v357_v35 = vmul.f32 %v1629_v12, %v355_v33 }
 0x533   :  { %387 = vrot.lane.b32.xlu1 %v381_v32, %s1790_s16 }
 0x534   :  { %383 = vrot.lane.b32.xlu0 %v357_v35, %s1791_s3 }
 0x5a5   :  { %v388_v36 = vpop.permute.xlu1 %387 }
 0x5a6   :  { %v384_v37 = vpop.permute.xlu0 %383 }
 0x5a7   :  { %v390_v38 = vsel %vm254_vm1, %v384_v37, %v388_v36 }
 0x5a8   :  { %1405 = vmatmul.mubr.msk.f32.vlgmr.msra.gmra.mrb[2].mxu1 %vm151_vm2, %v390_v38 }
 0x5a9   :  { %1518 = vmatpush1.bf16.msra.mxu1 %v1845_v8  ;;  %726 = vmatprep.mubr.f32.mxu1 %v1789_v0 }
 0x5aa   :  { %1520 = vmatprep.subr.bf16.mxu1 %v1847_v9 }
 0x5ad   :  { %1522 = vmatpush1.bf16.msra.mxu1 %v1851_v14 }
 0x5ae   :  { %1524 = vmatprep.subr.bf16.mxu1 %v1854_v16 }
 0x5b1   :  { %1526 = vmatpush1.bf16.msra.mxu1 %v1867_v23 }
 0x5b2   :  { %1528 = vmatprep.subr.bf16.mxu1 %v1871_v24 }
 0x5b5   :  { %1530 = vmatpush1.bf16.msra.mxu1 %v1878_v27 }
 0x5b6   :  { %1548 = vmatprep.subr.bf16.mxu1 %v1843_v4 }
 0x67b   :  { %v460_v39 = vpop.f32.mrb[2].mxu1 }
 0x67c   :  { %v461_v40 = vadd.f32 %v460_v39, %v1906_v34  ;;  %v462_v42 = vpop.f32.mrb[3].mxu1 }
 0x67d   :  { %v463_v43 = vadd.f32 %v462_v42, %v1925_v55 }
 0x67e   :  { %v467_v44 = vadd.f32 %v465_v41, %v461_v40 }
 0x67f   :  { %1634 = vtanh.f32 %v463_v43  ;;  %v1407_v47 = vmul.f32 -1.442695, %v463_v43 }
 0x680   :  { %1636 = vtanh.f32 %v467_v44  ;;  %v1406_v48 = vmul.f32 -1.442695, %v467_v44 }
 0x681   :  { %1638 = vpow2.f32 %v1407_v47 }
 0x682   :  { %1640 = vpow2.f32 %v1406_v48 }
 0x689   :  { %v1635_v45 = vpop.eup %1634 }
 0x68a   :  { %v1637_v46 = vpop.eup %1636  ;;  %501 = vrot.lane.b32.xlu1 %v1635_v45, %s1790_s16 }
 0x68b   :  { %477 = vrot.lane.b32.xlu0 %v1637_v46, %s1790_s16  ;;  %v1639_v49 = vpop.eup %1638 }
 0x68c   :  { %v1641_v50 = vpop.eup %1640  ;;  %v495_v51 = vadd.f32 1.0, %v1639_v49 }
 0x68d   :  { %v471_v52 = vadd.f32 1.0, %v1641_v50 }
 0x68e   :  { %1642 = vrcp.f32 %v495_v51 }
 0x68f   :  { %1644 = vrcp.f32 %v471_v52 }
 0x698   :  { %v1643_v53 = vpop.eup %1642 }
 0x699   :  { %v1645_v56 = vpop.eup %1644  ;;  %v499_v60 = vmul.f32 %v1643_v53, %v375_v21 }
 0x69a   :  { %v475_v62 = vmul.f32 %v1645_v56, %v351_v25 }
 0x6fc   :  { %v502_v54 = vpop.permute.xlu1 %501 }
 0x6fd   :  { %v504_v57 = vmul.f32 %v1643_v53, %v502_v54  ;;  %v478_v58 = vpop.permute.xlu0 %477 }
 0x6fe   :  { %v480_v59 = vmul.f32 %v1645_v56, %v478_v58 }
 0x6ff   :  { %506 = vrot.lane.b32.xlu1 %v504_v57, %s1791_s3 }
 0x700   :  { %482 = vrot.lane.b32.xlu0 %v480_v59, %s1791_s3 }
 0x771   :  { %v507_v61 = vpop.permute.xlu1 %506 }
 0x772   :  { %v509_v63 = vadd.f32 %v507_v61, %v499_v60  ;;  %v483_v1 = vpop.permute.xlu0 %482 }
 0x773   :  { %v485_v2 = vadd.f32 %v483_v1, %v475_v62 }
 0x774   :  { %1646 = vtanh.f32 %v509_v63 }
 0x775   :  { %1648 = vtanh.f32 %v485_v2 }
 0x77e   :  { %v1647_v3 = vpop.eup %1646 }
 0x77f   :  { %v1649_v5 = vpop.eup %1648  ;;  %512 = vrot.lane.b32.xlu1 %v1647_v3, %s1790_s16 }
 0x780   :  { %488 = vrot.lane.b32.xlu0 %v1649_v5, %s1790_s16 }
 0x7f1   :  { %v513_v6 = vpop.permute.xlu1 %512 }
 0x7f2   :  { %v515_v7 = vmul.f32 %v1643_v53, %v513_v6  ;;  %v489_v10 = vpop.permute.xlu0 %488 }
 0x7f3   :  { %v491_v11 = vmul.f32 %v1645_v56, %v489_v10 }
 0x7f4   :  { %521 = vrot.lane.b32.xlu1 %v515_v7, %s1790_s16 }
 0x7f5   :  { %517 = vrot.lane.b32.xlu0 %v491_v11, %s1791_s3 }
 0x866   :  { %v522_v12 = vpop.permute.xlu1 %521 }
 0x867   :  { %v518_v13 = vpop.permute.xlu0 %517 }
 0x868   :  { %v524_v15 = vsel %vm254_vm1, %v518_v13, %v522_v12 }
 0x869   :  { %1408 = vmatmul.mubr.msk.f32.vlgmr.msra.gmra.mrb[4].mxu0 %vm151_vm2, %v524_v15 }
 0x86a   :  { %1534 = vmatpush1.bf16.msra.mxu0 %v1845_v8  ;;  %858 = vmatprep.mubr.f32.mxu0 %v1789_v0 }
 0x86b   :  { %1536 = vmatprep.subr.bf16.mxu0 %v1847_v9 }
 0x86e   :  { %1538 = vmatpush1.bf16.msra.mxu0 %v1851_v14 }
 0x86f   :  { %1540 = vmatprep.subr.bf16.mxu0 %v1854_v16 }
 0x872   :  { %1542 = vmatpush1.bf16.msra.mxu0 %v1867_v23 }
 0x873   :  { %1544 = vmatprep.subr.bf16.mxu0 %v1871_v24 }
 0x876   :  { %1546 = vmatpush1.bf16.msra.mxu0 %v1878_v27 }
 0x877   :  { %1564 = vmatprep.subr.bf16.mxu0 %v1843_v4 }
 0x93c   :  { %v594_v17 = vpop.f32.mrb[4].mxu0 }
 0x93d   :  { %v595_v18 = vadd.f32 %v594_v17, %v1906_v34  ;;  %v596_v20 = vpop.f32.mrb[5].mxu0 }
 0x93e   :  { %v597_v21 = vadd.f32 %v596_v20, %v1925_v55 }
 0x93f   :  { %v601_v22 = vadd.f32 %v599_v19, %v595_v18 }
 0x940   :  { %1650 = vtanh.f32 %v597_v21  ;;  %v1410_v28 = vmul.f32 -1.442695, %v597_v21 }
 0x941   :  { %1652 = vtanh.f32 %v601_v22  ;;  %v1409_v30 = vmul.f32 -1.442695, %v601_v22 }
 0x942   :  { %1654 = vpow2.f32 %v1410_v28 }
 0x943   :  { %1656 = vpow2.f32 %v1409_v30 }
 0x94a   :  { %v1651_v25 = vpop.eup %1650 }
 0x94b   :  { %v1653_v26 = vpop.eup %1652  ;;  %635 = vrot.lane.b32.xlu1 %v1651_v25, %s1790_s16 }
 0x94c   :  { %611 = vrot.lane.b32.xlu0 %v1653_v26, %s1790_s16  ;;  %v1655_v32 = vpop.eup %1654 }
 0x94d   :  { %v1657_v33 = vpop.eup %1656  ;;  %v629_v35 = vadd.f32 1.0, %v1655_v32 }
 0x94e   :  { %v605_v31 = vadd.f32 1.0, %v1657_v33 }
 0x94f   :  { %1658 = vrcp.f32 %v629_v35 }
 0x950   :  { %1660 = vrcp.f32 %v605_v31 }
 0x959   :  { %v1659_v36 = vpop.eup %1658 }
 0x95a   :  { %v1661_v38 = vpop.eup %1660  ;;  %v633_v42 = vmul.f32 %v1659_v36, %v509_v63 }
 0x95b   :  { %v609_v44 = vmul.f32 %v1661_v38, %v485_v2 }
 0x9bd   :  { %v636_v37 = vpop.permute.xlu1 %635 }
 0x9be   :  { %v638_v39 = vmul.f32 %v1659_v36, %v636_v37  ;;  %v612_v40 = vpop.permute.xlu0 %611 }
 0x9bf   :  { %v614_v41 = vmul.f32 %v1661_v38, %v612_v40  ;;  %v866_v40 = vrot.slane %v1899_v29, 2 }
 0x9c0   :  { %640 = vrot.lane.b32.xlu1 %v638_v39, %s1791_s3 }
 0x9c1   :  { %616 = vrot.lane.b32.xlu0 %v614_v41, %s1791_s3 }
 0xa32   :  { %v641_v43 = vpop.permute.xlu1 %640 }
 0xa33   :  { %v643_v45 = vadd.f32 %v641_v43, %v633_v42  ;;  %v617_v46 = vpop.permute.xlu0 %616 }
 0xa34   :  { %v619_v47 = vadd.f32 %v617_v46, %v609_v44 }
 0xa35   :  { %1662 = vtanh.f32 %v643_v45 }
 0xa36   :  { %1664 = vtanh.f32 %v619_v47 }
 0xa3f   :  { %v1663_v48 = vpop.eup %1662 }
 0xa40   :  { %v1665_v49 = vpop.eup %1664  ;;  %646 = vrot.lane.b32.xlu1 %v1663_v48, %s1790_s16 }
 0xa41   :  { %622 = vrot.lane.b32.xlu0 %v1665_v49, %s1790_s16 }
 0xab2   :  { %v647_v50 = vpop.permute.xlu1 %646 }
 0xab3   :  { %v649_v51 = vmul.f32 %v1659_v36, %v647_v50  ;;  %v623_v52 = vpop.permute.xlu0 %622 }
 0xab4   :  { %v625_v53 = vmul.f32 %v1661_v38, %v623_v52 }
 0xab5   :  { %655 = vrot.lane.b32.xlu1 %v649_v51, %s1790_s16 }
 0xab6   :  { %651 = vrot.lane.b32.xlu0 %v625_v53, %s1791_s3 }
 0xb27   :  { %v656_v54 = vpop.permute.xlu1 %655 }
 0xb28   :  { %v652_v56 = vpop.permute.xlu0 %651 }
 0xb29   :  { %v658_v57 = vsel %vm254_vm1, %v652_v56, %v656_v54 }
 0xb2a   :  { %1411 = vmatmul.mubr.msk.f32.vlgmr.msra.gmra.mrb[4].mxu1 %vm151_vm2, %v658_v57 }
 0xb2b   :  { %1550 = vmatpush1.bf16.msra.mxu1 %v1845_v8  ;;  %993 = vmatprep.mubr.f32.mxu1 %v1789_v0 }
 0xb2c   :  { %1552 = vmatprep.subr.bf16.mxu1 %v1847_v9 }
 0xb2f   :  { %1554 = vmatpush1.bf16.msra.mxu1 %v1851_v14 }
 0xb30   :  { %1556 = vmatprep.subr.bf16.mxu1 %v1854_v16 }
 0xb33   :  { %1558 = vmatpush1.bf16.msra.mxu1 %v1867_v23 }
 0xb34   :  { %1560 = vmatprep.subr.bf16.mxu1 %v1871_v24 }
 0xb37   :  { %1562 = vmatpush1.bf16.msra.mxu1 %v1878_v27 }
 0xb38   :  { %1580 = vmatprep.subr.bf16.mxu1 %v1843_v4 }
 0xbfd   :  { %v728_v58 = vpop.f32.mrb[4].mxu1 }
 0xbfe   :  { %v729_v59 = vadd.f32 %v728_v58, %v1906_v34  ;;  %v730_v60 = vpop.f32.mrb[5].mxu1 }
 0xbff   :  { %v731_v61 = vadd.f32 %v730_v60, %v1925_v55 }
 0xc00   :  { %v733_v62 = vadd.f32 %v1899_v29, %v729_v59 }
 0xc01   :  { %1666 = vtanh.f32 %v731_v61  ;;  %v1413_v2 = vmul.f32 -1.442695, %v731_v61 }
 0xc02   :  { %1668 = vtanh.f32 %v733_v62  ;;  %v1412_v3 = vmul.f32 -1.442695, %v733_v62 }
 0xc03   :  { %1670 = vpow2.f32 %v1413_v2 }
 0xc04   :  { %1672 = vpow2.f32 %v1412_v3 }
 0xc0b   :  { %v1667_v63 = vpop.eup %1666 }
 0xc0c   :  { %v1669_v1 = vpop.eup %1668  ;;  %767 = vrot.lane.b32.xlu1 %v1667_v63, %s1790_s16 }
 0xc0d   :  { %743 = vrot.lane.b32.xlu0 %v1669_v1, %s1790_s16  ;;  %v1671_v4 = vpop.eup %1670 }
 0xc0e   :  { %v1673_v5 = vpop.eup %1672  ;;  %v761_v6 = vadd.f32 1.0, %v1671_v4 }
 0xc0f   :  { %v737_v7 = vadd.f32 1.0, %v1673_v5 }
 0xc10   :  { %1674 = vrcp.f32 %v761_v6 }
 0xc11   :  { %1676 = vrcp.f32 %v737_v7 }
 0xc1a   :  { %v1675_v10 = vpop.eup %1674 }
 0xc1b   :  { %v1677_v12 = vpop.eup %1676  ;;  %v765_v18 = vmul.f32 %v1675_v10, %v643_v45 }
 0xc1c   :  { %v741_v20 = vmul.f32 %v1677_v12, %v619_v47 }
 0xc7e   :  { %v768_v11 = vpop.permute.xlu1 %767 }
 0xc7f   :  { %v770_v13 = vmul.f32 %v1675_v10, %v768_v11  ;;  %v744_v15 = vpop.permute.xlu0 %743 }
 0xc80   :  { %v746_v17 = vmul.f32 %v1677_v12, %v744_v15 }
 0xc81   :  { %772 = vrot.lane.b32.xlu1 %v770_v13, %s1791_s3 }
 0xc82   :  { %748 = vrot.lane.b32.xlu0 %v746_v17, %s1791_s3  ;;  %v1000_v17 = vrot.slane %v1899_v29, 4 }
 0xcf3   :  { %v773_v19 = vpop.permute.xlu1 %772 }
 0xcf4   :  { %v775_v21 = vadd.f32 %v773_v19, %v765_v18  ;;  %v749_v22 = vpop.permute.xlu0 %748 }
 0xcf5   :  { %v751_v25 = vadd.f32 %v749_v22, %v741_v20 }
 0xcf6   :  { %1678 = vtanh.f32 %v775_v21 }
 0xcf7   :  { %1680 = vtanh.f32 %v751_v25 }
 0xd00   :  { %v1679_v26 = vpop.eup %1678 }
 0xd01   :  { %v1681_v28 = vpop.eup %1680  ;;  %778 = vrot.lane.b32.xlu1 %v1679_v26, %s1790_s16 }
 0xd02   :  { %754 = vrot.lane.b32.xlu0 %v1681_v28, %s1790_s16 }
 0xd73   :  { %v779_v30 = vpop.permute.xlu1 %778 }
 0xd74   :  { %v781_v32 = vmul.f32 %v1675_v10, %v779_v30  ;;  %v755_v33 = vpop.permute.xlu0 %754 }
 0xd75   :  { %v757_v35 = vmul.f32 %v1677_v12, %v755_v33 }
 0xd76   :  { %787 = vrot.lane.b32.xlu1 %v781_v32, %s1790_s16 }
 0xd77   :  { %783 = vrot.lane.b32.xlu0 %v757_v35, %s1791_s3 }
 0xde8   :  { %v788_v31 = vpop.permute.xlu1 %787 }
 0xde9   :  { %v784_v36 = vpop.permute.xlu0 %783 }
 0xdea   :  { %v790_v37 = vsel %vm254_vm1, %v784_v36, %v788_v31 }
 0xdeb   :  { %1414 = vmatmul.mubr.msk.f32.vlgmr.msra.gmra.mrb[6].mxu0 %vm151_vm2, %v790_v37 }
 0xdec   :  { %1566 = vmatpush1.bf16.msra.mxu0 %v1845_v8  ;;  %1127 = vmatprep.mubr.f32.mxu0 %v1789_v0 }
 0xded   :  { %1568 = vmatprep.subr.bf16.mxu0 %v1847_v9 }
 0xdf0   :  { %1570 = vmatpush1.bf16.msra.mxu0 %v1851_v14 }
 0xdf1   :  { %1572 = vmatprep.subr.bf16.mxu0 %v1854_v16 }
 0xdf4   :  { %1574 = vmatpush1.bf16.msra.mxu0 %v1867_v23 }
 0xdf5   :  { %1576 = vmatprep.subr.bf16.mxu0 %v1871_v24 }
 0xdf8   :  { %1578 = vmatpush1.bf16.msra.mxu0 %v1878_v27 }
 0xebe   :  { %v860_v38 = vpop.f32.mrb[6].mxu0 }
 0xebf   :  { %v861_v39 = vadd.f32 %v860_v38, %v1906_v34  ;;  %v862_v41 = vpop.f32.mrb[7].mxu0 }
 0xec0   :  { %v863_v42 = vadd.f32 %v862_v41, %v1925_v55 }
 0xec1   :  { %v868_v43 = vadd.f32 %v866_v40, %v861_v39 }
 0xec2   :  { %1682 = vtanh.f32 %v863_v42  ;;  %v1416_v46 = vmul.f32 -1.442695, %v863_v42 }
 0xec3   :  { %1684 = vtanh.f32 %v868_v43  ;;  %v1415_v47 = vmul.f32 -1.442695, %v868_v43 }
 0xec4   :  { %1686 = vpow2.f32 %v1416_v46 }
 0xec5   :  { %1688 = vpow2.f32 %v1415_v47 }
 0xecc   :  { %v1683_v44 = vpop.eup %1682 }
 0xecd   :  { %v1685_v45 = vpop.eup %1684  ;;  %902 = vrot.lane.b32.xlu1 %v1683_v44, %s1790_s16 }
 0xece   :  { %878 = vrot.lane.b32.xlu0 %v1685_v45, %s1790_s16  ;;  %v1687_v48 = vpop.eup %1686 }
 0xecf   :  { %v1689_v49 = vpop.eup %1688  ;;  %v896_v50 = vadd.f32 1.0, %v1687_v48 }
 0xed0   :  { %v872_v51 = vadd.f32 1.0, %v1689_v49 }
 0xed1   :  { %1690 = vrcp.f32 %v896_v50  ;;  %v1134_v50 = vrot.slane %v1899_v29, 6 }
 0xed2   :  { %1692 = vrcp.f32 %v872_v51 }
 0xedb   :  { %v1691_v52 = vpop.eup %1690 }
 0xedc   :  { %v1693_v54 = vpop.eup %1692  ;;  %v900_v59 = vmul.f32 %v1691_v52, %v775_v21 }
 0xedd   :  { %v876_v61 = vmul.f32 %v1693_v54, %v751_v25 }
 0xf3f   :  { %v903_v53 = vpop.permute.xlu1 %902 }
 0xf40   :  { %v905_v56 = vmul.f32 %v1691_v52, %v903_v53  ;;  %v879_v57 = vpop.permute.xlu0 %878 }
 0xf41   :  { %v881_v58 = vmul.f32 %v1693_v54, %v879_v57 }
 0xf42   :  { %907 = vrot.lane.b32.xlu1 %v905_v56, %s1791_s3 }
 0xf43   :  { %883 = vrot.lane.b32.xlu0 %v881_v58, %s1791_s3 }
 0xfb4   :  { %v908_v60 = vpop.permute.xlu1 %907 }
 0xfb5   :  { %v910_v62 = vadd.f32 %v908_v60, %v900_v59  ;;  %v884_v63 = vpop.permute.xlu0 %883 }
 0xfb6   :  { %v886_v1 = vadd.f32 %v884_v63, %v876_v61 }
 0xfb7   :  { %1694 = vtanh.f32 %v910_v62 }
 0xfb8   :  { %1696 = vtanh.f32 %v886_v1 }
 0xfc1   :  { %v1695_v2 = vpop.eup %1694 }
 0xfc2   :  { %v1697_v3 = vpop.eup %1696  ;;  %913 = vrot.lane.b32.xlu1 %v1695_v2, %s1790_s16 }
 0xfc3   :  { %889 = vrot.lane.b32.xlu0 %v1697_v3, %s1790_s16 }
0x1034   :  { %v914_v4 = vpop.permute.xlu1 %913 }
0x1035   :  { %v916_v5 = vmul.f32 %v1691_v52, %v914_v4  ;;  %v890_v6 = vpop.permute.xlu0 %889 }
0x1036   :  { %v892_v7 = vmul.f32 %v1693_v54, %v890_v6 }
0x1037   :  { %922 = vrot.lane.b32.xlu1 %v916_v5, %s1790_s16 }
0x1038   :  { %918 = vrot.lane.b32.xlu0 %v892_v7, %s1791_s3 }
0x10a9   :  { %v923_v10 = vpop.permute.xlu1 %922 }
0x10aa   :  { %v919_v11 = vpop.permute.xlu0 %918 }
0x10ab   :  { %v925_v12 = vsel %vm254_vm1, %v919_v11, %v923_v10 }
0x10ac   :  { %1417 = vmatmul.mubr.msk.f32.vlgmr.msra.gmra.mrb[6].mxu1 %vm151_vm2, %v925_v12 }
0x10ad   :  { %1582 = vmatpush1.bf16.msra.mxu1 %v1845_v8  ;;  %1261 = vmatprep.mubr.f32.mxu1 %v1789_v0 }
0x10ae   :  { %1584 = vmatprep.subr.bf16.mxu1 %v1847_v9 }
0x10b1   :  { %1586 = vmatpush1.bf16.msra.mxu1 %v1851_v14 }
0x10b2   :  { %1588 = vmatprep.subr.bf16.mxu1 %v1854_v16 }
0x10b5   :  { %1590 = vmatpush1.bf16.msra.mxu1 %v1867_v23 }
0x10b6   :  { %1592 = vmatprep.subr.bf16.mxu1 %v1871_v24 }
0x10b9   :  { %1594 = vmatpush1.bf16.msra.mxu1 %v1878_v27 }
0x117f   :  { %v995_v13 = vpop.f32.mrb[6].mxu1 }
0x1180   :  { %v996_v15 = vadd.f32 %v995_v13, %v1906_v34  ;;  %v997_v8 = vpop.f32.mrb[7].mxu1 }
0x1181   :  { %v998_v18 = vadd.f32 %v997_v8, %v1925_v55 }
0x1182   :  { %v1002_v19 = vadd.f32 %v1000_v17, %v996_v15 }
0x1183   :  { %1698 = vtanh.f32 %v998_v18  ;;  %v1419_v16 = vmul.f32 -1.442695, %v998_v18 }
0x1184   :  { %1700 = vtanh.f32 %v1002_v19  ;;  %v1418_v23 = vmul.f32 -1.442695, %v1002_v19 }
0x1185   :  { %1702 = vpow2.f32 %v1419_v16 }
0x1186   :  { %1704 = vpow2.f32 %v1418_v23 }
0x118d   :  { %v1699_v9 = vpop.eup %1698 }
0x118e   :  { %v1701_v14 = vpop.eup %1700  ;;  %1036 = vrot.lane.b32.xlu1 %v1699_v9, %s1790_s16 }
0x118f   :  { %1012 = vrot.lane.b32.xlu0 %v1701_v14, %s1790_s16  ;;  %v1703_v24 = vpop.eup %1702 }
0x1190   :  { %v1705_v27 = vpop.eup %1704  ;;  %v1030_v20 = vadd.f32 1.0, %v1703_v24 }
0x1191   :  { %v1006_v21 = vadd.f32 1.0, %v1705_v27 }
0x1192   :  { %1706 = vrcp.f32 %v1030_v20 }
0x1193   :  { %1708 = vrcp.f32 %v1006_v21 }
0x119c   :  { %v1707_v22 = vpop.eup %1706 }
0x119d   :  { %v1709_v26 = vpop.eup %1708  ;;  %v1034_v33 = vmul.f32 %v1707_v22, %v910_v62 }
0x119e   :  { %v1010_v31 = vmul.f32 %v1709_v26, %v886_v1 }
0x1200   :  { %v1037_v25 = vpop.permute.xlu1 %1036 }
0x1201   :  { %v1039_v28 = vmul.f32 %v1707_v22, %v1037_v25  ;;  %v1013_v30 = vpop.permute.xlu0 %1012 }
0x1202   :  { %v1015_v32 = vmul.f32 %v1709_v26, %v1013_v30 }
0x1203   :  { %1041 = vrot.lane.b32.xlu1 %v1039_v28, %s1791_s3 }
0x1204   :  { %1017 = vrot.lane.b32.xlu0 %v1015_v32, %s1791_s3 }
0x1275   :  { %v1042_v35 = vpop.permute.xlu1 %1041 }
0x1276   :  { %v1044_v36 = vadd.f32 %v1042_v35, %v1034_v33  ;;  %v1018_v37 = vpop.permute.xlu0 %1017  ;;  %v1297_v35 = vld [vmem:[%s2099_s4 + $0x8] sm:$0xff] }
0x1277   :  { %v1020_v38 = vadd.f32 %v1018_v37, %v1010_v31  ;;  %v1298_v31 = vld [vmem:[%s2099_s4 + $0x10] sm:$0xff] }
0x1278   :  { %1710 = vtanh.f32 %v1044_v36 }
0x1279   :  { %1712 = vtanh.f32 %v1020_v38 }
0x1282   :  { %v1711_v39 = vpop.eup %1710 }
0x1283   :  { %v1713_v40 = vpop.eup %1712  ;;  %1047 = vrot.lane.b32.xlu1 %v1711_v39, %s1790_s16 }
0x1284   :  { %1023 = vrot.lane.b32.xlu0 %v1713_v40, %s1790_s16 }
0x12f5   :  { %v1048_v41 = vpop.permute.xlu1 %1047 }
0x12f6   :  { %v1050_v42 = vmul.f32 %v1707_v22, %v1048_v41  ;;  %v1024_v43 = vpop.permute.xlu0 %1023 }
0x12f7   :  { %v1026_v44 = vmul.f32 %v1709_v26, %v1024_v43 }
0x12f8   :  { %1056 = vrot.lane.b32.xlu1 %v1050_v42, %s1790_s16 }
0x12f9   :  { %1052 = vrot.lane.b32.xlu0 %v1026_v44, %s1791_s3 }
0x136a   :  { %v1057_v45 = vpop.permute.xlu1 %1056 }
0x136b   :  { %v1053_v46 = vpop.permute.xlu0 %1052 }
0x136c   :  { %v1059_v47 = vsel %vm254_vm1, %v1053_v46, %v1057_v45 }
0x136d   :  { %1420 = vmatmul.mubr.msk.f32.vlgmr.msra.gmra.mrb[8].mxu0 %vm151_vm2, %v1059_v47 }
0x136e   :  { %1448 = vmatprep.mubr.msk.f32.mxu0 %vm1793_vm3, %v1789_v0  ;;  %v1425_v0 = vld [vmem:[%s2100_s5] ss:$0 sm:$0xff] }
0x1440   :  { %v1129_v48 = vpop.f32.mrb[8].mxu0 }
0x1441   :  { %v1130_v49 = vadd.f32 %v1129_v48, %v1906_v34  ;;  %v1131_v51 = vpop.f32.mrb[9].mxu0 }
0x1442   :  { %v1132_v52 = vadd.f32 %v1131_v51, %v1925_v55 }
0x1443   :  { %v1136_v53 = vadd.f32 %v1134_v50, %v1130_v49 }
0x1444   :  { %1714 = vtanh.f32 %v1132_v52  ;;  %v1422_v57 = vmul.f32 -1.442695, %v1132_v52 }
0x1445   :  { %1716 = vtanh.f32 %v1136_v53  ;;  %v1421_v58 = vmul.f32 -1.442695, %v1136_v53 }
0x1446   :  { %1718 = vpow2.f32 %v1422_v57 }
0x1447   :  { %1720 = vpow2.f32 %v1421_v58 }
0x144e   :  { %v1715_v54 = vpop.eup %1714 }
0x144f   :  { %v1717_v56 = vpop.eup %1716  ;;  %1170 = vrot.lane.b32.xlu1 %v1715_v54, %s1790_s16 }
0x1450   :  { %1146 = vrot.lane.b32.xlu0 %v1717_v56, %s1790_s16  ;;  %v1719_v59 = vpop.eup %1718 }
0x1451   :  { %v1721_v34 = vpop.eup %1720  ;;  %v1164_v60 = vadd.f32 1.0, %v1719_v59 }
0x1452   :  { %v1140_v29 = vadd.f32 1.0, %v1721_v34 }
0x1453   :  { %1722 = vrcp.f32 %v1164_v60 }
0x1454   :  { %1724 = vrcp.f32 %v1140_v29 }
0x145d   :  { %v1723_v61 = vpop.eup %1722 }
0x145e   :  { %v1725_v63 = vpop.eup %1724  ;;  %v1168_v4 = vmul.f32 %v1723_v61, %v1044_v36  ;;  %v1792_v36 = vmov 0.0|0.0  }
0x145f   :  { %v1144_v6 = vmul.f32 %v1725_v63, %v1020_v38  ;;  %1595 = vmatprep.subr.bf16.mxu0 %v1792_v36  ;;  %v1299_v38 = vld [vmem:[%s2099_s4 + $0x18] sm:$0xff] }
0x1460   :  { %v1599_v39 = vpack.c.bf16 %v1299_v38, %v1298_v31 }
0x14c1   :  { %v1171_v62 = vpop.permute.xlu1 %1170 }
0x14c2   :  { %v1173_v1 = vmul.f32 %v1723_v61, %v1171_v62  ;;  %v1147_v2 = vpop.permute.xlu0 %1146 }
0x14c3   :  { %v1149_v3 = vmul.f32 %v1725_v63, %v1147_v2 }
0x14c4   :  { %1175 = vrot.lane.b32.xlu1 %v1173_v1, %s1791_s3 }
0x14c5   :  { %1151 = vrot.lane.b32.xlu0 %v1149_v3, %s1791_s3 }
0x1536   :  { %v1176_v5 = vpop.permute.xlu1 %1175 }
0x1537   :  { %v1178_v7 = vadd.f32 %v1176_v5, %v1168_v4  ;;  %v1152_v10 = vpop.permute.xlu0 %1151 }
0x1538   :  { %v1154_v11 = vadd.f32 %v1152_v10, %v1144_v6 }
0x1539   :  { %1726 = vtanh.f32 %v1178_v7 }
0x153a   :  { %1728 = vtanh.f32 %v1154_v11 }
0x1543   :  { %v1727_v12 = vpop.eup %1726 }
0x1544   :  { %v1729_v13 = vpop.eup %1728  ;;  %1181 = vrot.lane.b32.xlu1 %v1727_v12, %s1790_s16 }
0x1545   :  { %1157 = vrot.lane.b32.xlu0 %v1729_v13, %s1790_s16 }
0x15b6   :  { %v1182_v15 = vpop.permute.xlu1 %1181 }
0x15b7   :  { %v1184_v17 = vmul.f32 %v1723_v61, %v1182_v15  ;;  %v1158_v8 = vpop.permute.xlu0 %1157 }
0x15b8   :  { %v1160_v18 = vmul.f32 %v1725_v63, %v1158_v8 }
0x15b9   :  { %1190 = vrot.lane.b32.xlu1 %v1184_v17, %s1790_s16 }
0x15ba   :  { %1186 = vrot.lane.b32.xlu0 %v1160_v18, %s1791_s3 }
0x162b   :  { %v1191_v19 = vpop.permute.xlu1 %1190 }
0x162c   :  { %v1187_v9 = vpop.permute.xlu0 %1186 }
0x162d   :  { %v1193_v14 = vsel %vm254_vm1, %v1187_v9, %v1191_v19 }
0x162e   :  { %1423 = vmatmul.mubr.msk.f32.vlgmr.msra.gmra.mrb[8].mxu1 %vm151_vm2, %v1193_v14 }
0x1701   :  { %v1263_v16 = vpop.f32.mrb[8].mxu1 }
0x1702   :  { %v1264_v23 = vpop.f32.mrb[9].mxu1 }
0x1703   :  { %v1265_v24 = vadd.f32 %v1264_v23, %v1925_v55  ;;  %v1296_v55 = vld [vmem:[%s2099_s4] sm:$0xff] }
0x1704   :  { %v1596_v37 = vpack.c.bf16 %v1297_v35, %v1296_v55 }
0x1705   :  { %1730 = vtanh.f32 %v1265_v24  ;;  %v1424_v20 = vmul.f32 -1.442695, %v1265_v24 }
0x1706   :  { %1597 = vmatpush3.bf16.msra.mxu0 %v1596_v37 }
0x1707   :  { %1732 = vpow2.f32 %v1424_v20  ;;  %1598 = vmatprep.subr.bf16.mxu0 %v1792_v36 }
0x170a   :  { %1600 = vmatpush3.bf16.msra.mxu0 %v1599_v39 }
0x170f   :  { %v1731_v27 = vpop.eup %1730 }
0x1710   :  { %1276 = vrot.lane.b32.xlu0 %v1731_v27, %s1790_s16 }
0x1711   :  { %v1733_v21 = vpop.eup %1732 }
0x1712   :  { %v1270_v22 = vadd.f32 1.0, %v1733_v21 }
0x1714   :  { %1734 = vrcp.f32 %v1270_v22 }
0x171e   :  { %v1735_v25 = vpop.eup %1734 }
0x171f   :  { %v1274_v30 = vmul.f32 %v1735_v25, %v1178_v7 }
0x1782   :  { %v1277_v26 = vpop.permute.xlu0 %1276 }
0x1783   :  { %v1279_v28 = vmul.f32 %v1735_v25, %v1277_v26 }
0x1785   :  { %1281 = vrot.lane.b32.xlu1 %v1279_v28, %s1791_s3 }
0x17f7   :  { %v1282_v32 = vpop.permute.xlu1 %1281 }
0x17f8   :  { %v1284_v33 = vadd.f32 %v1282_v32, %v1274_v30 }
0x17fa   :  { %1736 = vtanh.f32 %v1284_v33 }
0x1804   :  { %v1737_v40 = vpop.eup %1736 }
0x1805   :  { %1287 = vrot.lane.b32.xlu0 %v1737_v40, %s1790_s16 }
0x1877   :  { %v1288_v41 = vpop.permute.xlu0 %1287 }
0x1878   :  { %v1290_v42 = vmul.f32 %v1735_v25, %v1288_v41 }
0x187a   :  { %v1292_v43 = vrot.slane %v1290_v42, 6 }
0x187c   :  { %v1295_v44 = vsel %vm1294_vm4, %v1160_v18, %v1292_v43 }
0x187d   :  { %1308 = vrot.lane.b32.xlu1 %v1295_v44, %s1791_s3 }
0x18ef   :  { %v1309_v45 = vpop.permute.xlu1 %1308 }
0x18f0   :  { %1449 = vmatmul.mubr.msk.f32.vlgmr.msra.gmra.mrb[10].mxu0 %vm254_vm1, %v1309_v45 }
0x19c3   :  { %v1378_v46 = vpop.f32.mrb[10].mxu0 }
0x19c4   :  { %v1379_v47 = vadd.f32 %v1425_v0, %v1378_v46  ;;  %v1450_v48 = vpop.f32.mrb[11].mxu0 }
0x19c6   :  { %1383 = vst.msk [vmem:[#allocation5] sm:$0xf] %vm1382_vm5, %v1379_v47 }
0x19c7   :  { %1771 = shalt.err (!%p1768_p12)
}
0x19c8   :  { %s1772_s7 = scalar_lea.hbm %s2101_s6, 64 }
0x19c9   :  { %p1773_p13 = scmp.ne.s32.totalorder %s2101_s6, %s1772_s7  ;;  %p1776_p0 = scmp.lt.u32.totalorder %s1772_s7, %s2101_s6 }
0x19cb   :  { %p1778_p1 = pnand %p1776_p0, %p1773_p13 }
0x19cd   :  { %1781 = shalt.err (!%p1778_p1)
}
0x19ce   :  { %1393 = dma.vmem_to_hbm [thread:$0]  %s1391_s27, 64, %s2101_s6, [#allocation4]  }
0x19cf   :  { %1784 = dma.done.wait [#allocation4], 64  }
0x19d0   :  { %1785 = vsyncadd [#allocation4], 4294967232 }
0x19d1   :  { %1397 = vsyncpa [#allocation3], 1 }
0x19d2   :  { %1398 = vsyncpa [#allocation4], 1 }

</bundles_post_ra>
